<compile_context>
chip_gen: v6e
topology: v6e:2x2x1
jax: 0.10.0
libtpu: 0.0.40
codegen_flags: <defaults>
</compile_context>

<pallas_src>
import functools

import jax
import jax.numpy as jnp
from jax import lax
from jax.experimental import pallas as pl
from jax.experimental.pallas import tpu as pltpu


# Safe on every TPU generation (v7x physical VMEM is 64 MiB).
_VMEM_LIMIT = 48 * 1024 * 1024


def _round_up(x, m):
    return (x + m - 1) // m * m


def _pick_tile(m, cap):
    """Largest divisor of m that is <= cap, preferring multiples of 8 (sublane)."""
    if m <= cap:
        return m
    for t in range(cap, 0, -1):
        if m % t == 0 and t % 8 == 0:
            return t
    for t in range(cap, 0, -1):
        if m % t == 0:
            return t
    return m


# ----------------------------------------------------------------------------
# Kernel 1: tiled bf16 "tap" matmul   x (TM, Cin) @ W (Cin, 16*Cp) -> f32
# ----------------------------------------------------------------------------
def _tap_matmul_kernel(x_ref, w_ref, o_ref):
    # x_ref: (TM, Cin) bf16, w_ref: (Cin, 16*Cp) bf16, o_ref: (TM, 16*Cp) f32
    o_ref[...] = jnp.dot(x_ref[...], w_ref[...],
                         preferred_element_type=jnp.float32)


def _tap_matmul(x_flat, w_mat, *, row_cap):
    n, m, cin = x_flat.shape
    k16 = w_mat.shape[1]
    tm = _pick_tile(m, row_cap)
    return pl.pallas_call(
        _tap_matmul_kernel,
        out_shape=jax.ShapeDtypeStruct((n, m, k16), jnp.float32),
        grid=(n, m // tm),
        in_specs=[
            # leading size-1 batch dim squeezed out of the kernel Ref
            pl.BlockSpec((None, tm, cin), lambda b, i: (b, i, 0)),
            # constant index map -> weight stays VMEM-resident across the grid
            pl.BlockSpec((cin, k16), lambda b, i: (0, 0)),
        ],
        out_specs=pl.BlockSpec((None, tm, k16), lambda b, i: (b, i, 0)),
        compiler_params=pltpu.CompilerParams(
            dimension_semantics=("parallel", "parallel"),
            vmem_limit_bytes=_VMEM_LIMIT),
    )(x_flat, w_mat)


# ----------------------------------------------------------------------------
# Kernel 2: InstanceNorm pass 1 — per-(sample, channel) sum / sum-of-squares,
#           accumulated across spatial tiles (output-resident accumulator).
# ----------------------------------------------------------------------------
def _inorm_stats_kernel(z_ref, sum_ref, ssq_ref):
    # z_ref: (TM, C) f32 ; sum_ref / ssq_ref: (1, C) f32, resident across axis 1
    @pl.when(pl.program_id(1) == 0)
    def _init():
        sum_ref[...] = jnp.zeros_like(sum_ref)
        ssq_ref[...] = jnp.zeros_like(ssq_ref)

    z = z_ref[...]
    sum_ref[...] += jnp.sum(z, axis=0, keepdims=True)
    ssq_ref[...] += jnp.sum(z * z, axis=0, keepdims=True)


def _inorm_stats(z_flat, *, row_cap):
    n, m, c = z_flat.shape
    tm = _pick_tile(m, row_cap)
    return pl.pallas_call(
        _inorm_stats_kernel,
        out_shape=(jax.ShapeDtypeStruct((n, 1, c), jnp.float32),
                   jax.ShapeDtypeStruct((n, 1, c), jnp.float32)),
        grid=(n, m // tm),
        in_specs=[pl.BlockSpec((None, tm, c), lambda b, i: (b, i, 0))],
        out_specs=(pl.BlockSpec((None, 1, c), lambda b, i: (b, 0, 0)),
                   pl.BlockSpec((None, 1, c), lambda b, i: (b, 0, 0))),
        compiler_params=pltpu.CompilerParams(
            dimension_semantics=("parallel", "arbitrary"),
            vmem_limit_bytes=_VMEM_LIMIT),
    )(z_flat)


# ----------------------------------------------------------------------------
# Kernel 3: InstanceNorm pass 2 — normalize + ReLU, tiled over spatial rows.
# ----------------------------------------------------------------------------
def _inorm_relu_kernel(z_ref, mu_ref, rs_ref, o_ref):
    # z_ref/o_ref: (TM, C) f32 ; mu_ref/rs_ref: (1, C) f32
    y = (z_ref[...] - mu_ref[...]) * rs_ref[...]
    o_ref[...] = jnp.maximum(y, 0.0)


def _inorm_relu(z_flat, mean, rstd, *, row_cap):
    n, m, c = z_flat.shape
    tm = _pick_tile(m, row_cap)
    return pl.pallas_call(
        _inorm_relu_kernel,
        out_shape=jax.ShapeDtypeStruct((n, m, c), jnp.float32),
        grid=(n, m // tm),
        in_specs=[
            pl.BlockSpec((None, tm, c), lambda b, i: (b, i, 0)),
            pl.BlockSpec((None, 1, c), lambda b, i: (b, 0, 0)),
            pl.BlockSpec((None, 1, c), lambda b, i: (b, 0, 0)),
        ],
        out_specs=pl.BlockSpec((None, tm, c), lambda b, i: (b, i, 0)),
        compiler_params=pltpu.CompilerParams(
            dimension_semantics=("parallel", "parallel"),
            vmem_limit_bytes=_VMEM_LIMIT),
    )(z_flat, mean, rstd)


# ----------------------------------------------------------------------------
# Upsample forward
# ----------------------------------------------------------------------------
def upsample_forward(x_nchw, weight, bias, *, shortcut=None, dropout=True,
                     dropout_rng=None, eps=1e-5, mm_rows=512, norm_rows=1024):
    """CycleGAN `Upsample` forward.

    x_nchw : (N, Cin, H, W) f32
    weight : (Cin, Cout, 4, 4) f32   (PyTorch ConvTranspose2d layout)
    bias   : (Cout,) f32
    Returns (N, Cout [+ shortcut channels], 2H, 2W) f32.
    `mm_rows` / `norm_rows` are spatial-tile caps; raise them (512-2048) for
    production sizes subject to the per-generation VMEM budget.
    """
    N, Cin, H, W = x_nchw.shape
    Cin_w, Cout, KH, KW = weight.shape
    assert (Cin_w, KH, KW) == (Cin, 4, 4)
    OH, OW = 2 * H, 2 * W
    Cp = _round_up(Cout, 8)  # lane-friendly channel padding (16*Cp % 128 == 0)

    # ---- layout plumbing: NCHW -> (N, H*W, Cin) bf16 -------------------------
    x_flat = jnp.transpose(x_nchw, (0, 2, 3, 1)).reshape(N, H * W, Cin)
    x_bf16 = x_flat.astype(jnp.bfloat16)

    # weight (Cin, Cout, 4, 4) -> (Cin, 4, 4, Cp) -> (Cin, 16*Cp) bf16
    w_pad = jnp.pad(weight, ((0, 0), (0, Cp - Cout), (0, 0), (0, 0)))
    w_mat = jnp.transpose(w_pad, (0, 2, 3, 1)).reshape(Cin, 16 * Cp)
    w_mat = w_mat.astype(jnp.bfloat16)
    b_pad = jnp.pad(bias, (0, Cp - Cout)).astype(jnp.float32)

    # ---- Pallas kernel 1: tap matmul (input read exactly once) ---------------
    taps = _tap_matmul(x_bf16, w_mat, row_cap=mm_rows)      # (N, H*W, 16*Cp) f32
    taps = taps.reshape(N, H, W, 4, 4, Cp)

    # ---- overlap-add ("col2im") of the 16 tap planes + bias (JAX glue) -------
    # ConvTranspose2d: out[2*ih - 1 + kh, 2*iw - 1 + kw] += tap[ih, iw, kh, kw]
    full = jnp.zeros((N, OH + 3, OW + 3, Cp), jnp.float32)
    for kh in range(4):
        for kw in range(4):
            full = full.at[:, kh:kh + OH:2, kw:kw + OW:2, :].add(
                taps[:, :, :, kh, kw, :])
    z = full[:, 1:1 + OH, 1:1 + OW, :] + b_pad.reshape(1, 1, 1, Cp)
    # (bias is cancelled exactly by the InstanceNorm mean; kept for fidelity)
    z_flat = z.reshape(N, OH * OW, Cp)

    # ---- Pallas kernel 2 + tiny finalize: per-channel mean / rstd ------------
    s, sq = _inorm_stats(z_flat, row_cap=norm_rows)          # (N, 1, Cp) each
    m_total = float(OH * OW)
    mean = s / m_total
    var = jnp.maximum(sq / m_total - mean * mean, 0.0)       # biased variance
    rstd = lax.rsqrt(var + eps)

    # ---- Pallas kernel 3: normalize + ReLU ------------------------------------
    y_flat = _inorm_relu(z_flat, mean, rstd, row_cap=norm_rows)
    y = y_flat.reshape(N, OH, OW, Cp)[..., :Cout]
    y = jnp.transpose(y, (0, 3, 1, 2))                       # -> NCHW

    # ---- Dropout2d(0.5): identity in eval; per-channel mask in training ------
    if dropout and dropout_rng is not None:
        keep = jax.random.bernoulli(dropout_rng, 0.5, (N, Cout, 1, 1))
        y = jnp.where(keep, y * 2.0, 0.0)

    # ---- optional shortcut concat (torch.cat along channels) -----------------
    if shortcut is not None:
        y = jnp.concatenate([y, shortcut.astype(y.dtype)], axis=1)
    return y


# ----------------------------------------------------------------------------
# Pure-JAX (XLA) reference for validation (eval-mode forward, no dropout rng)
# ----------------------------------------------------------------------------
def upsample_reference(x_nchw, weight, bias, eps=1e-5):
    w_flip = jnp.transpose(weight, (1, 0, 2, 3))[:, :, ::-1, ::-1]  # (Cout,Cin,4,4)
    y = lax.conv_general_dilated(
        x_nchw, w_flip, window_strides=(1, 1),
        padding=((2, 2), (2, 2)), lhs_dilation=(2, 2),
        dimension_numbers=("NCHW", "OIHW", "NCHW"))
    y = y + bias.reshape(1, -1, 1, 1)
    mu = jnp.mean(y, axis=(2, 3), keepdims=True)
    var = jnp.mean((y - mu) ** 2, axis=(2, 3), keepdims=True)
    y = (y - mu) * lax.rsqrt(var + eps)
    return jnp.maximum(y, 0.0)


if __name__ == "__main__":
    key = jax.random.PRNGKey(0)
    k_x, k_w, k_b = jax.random.split(key, 3)

    # Small but shape-valid example: N=2, Cin=64, Cout=30 (exercises the
    # channel-padding path), 16x16 spatial -> output (2, 30, 32, 32).
    N, Cin, Cout, H, W = 2, 64, 30, 16, 16
    x = jax.random.normal(k_x, (N, Cin, H, W), dtype=jnp.float32)
    weight = 0.02 * jax.random.normal(k_w, (Cin, Cout, 4, 4), dtype=jnp.float32)
    bias = 0.02 * jax.random.normal(k_b, (Cout,), dtype=jnp.float32)

    # Small tile caps so the demo exercises multi-step grids on every kernel.
    fwd = jax.jit(functools.partial(upsample_forward, mm_rows=128, norm_rows=512))
    out = fwd(x, weight, bias)
    jax.block_until_ready(out)

    assert out.shape == (N, Cout, 2 * H, 2 * W), out.shape
    assert bool(jnp.all(jnp.isfinite(out)))

    # Numerical check against the pure-JAX reference (bf16 matmul tolerance).
    ref = upsample_reference(x, weight, bias)
    max_err = float(jnp.max(jnp.abs(out - ref)))
    assert max_err < 5e-2, f"max abs err vs reference = {max_err}"

    print("KERNEL_OK")
</pallas_src>

<mosaic_0001>
module attributes {stable_mosaic.version = 11 : i64} {
  func.func @_tap_matmul_kernel(%arg0: i32, %arg1: i32, %arg2: memref<1x128x64xbf16, #tpu.memory_space<vmem>>, %arg3: memref<64x512xbf16, #tpu.memory_space<vmem>>, %arg4: memref<1x128x512xf32, #tpu.memory_space<vmem>>) attributes {dimension_semantics = [#tpu.dimension_semantics<parallel>, #tpu.dimension_semantics<parallel>], iteration_bounds = array<i64: 2, 2>, scalar_prefetch = 0 : i64, scratch_operands = 0 : i64, tpu.core_type = #tpu.core_type<tc>, window_params = [{transform_indices = @transform_0, window_bounds = array<i64: 1, 128, 64>}, {pipeline_mode = #tpu.pipeline_mode<synchronous>, transform_indices = @transform_1, window_bounds = array<i64: 64, 512>}, {transform_indices = @transform_2, window_bounds = array<i64: 1, 128, 512>}]} {
    %c0 = arith.constant 0 : index
    %c0_0 = arith.constant 0 : index
    %c0_1 = arith.constant 0 : index
    %0 = vector.load %arg2[%c0, %c0_0, %c0_1] : memref<1x128x64xbf16, #tpu.memory_space<vmem>>, vector<1x128x64xbf16>
    %1 = vector.shape_cast %0 : vector<1x128x64xbf16> to vector<128x64xbf16>
    %c0_2 = arith.constant 0 : index
    %c0_3 = arith.constant 0 : index
    %2 = vector.load %arg3[%c0_2, %c0_3] : memref<64x512xbf16, #tpu.memory_space<vmem>>, vector<64x512xbf16>
    %cst = arith.constant dense<0.000000e+00> : vector<128x512xf32>
    %3 = tpu.matmul %1, %2, %cst {dimension_numbers = #tpu.dot_dimension_numbers<[1], [0], [0], [1], [0, 0, 1, 1], [], []>} : vector<128x64xbf16>, vector<64x512xbf16>, vector<128x512xf32> -> vector<128x512xf32>
    %c0_4 = arith.constant 0 : index
    %c0_5 = arith.constant 0 : index
    %c0_6 = arith.constant 0 : index
    %4 = vector.load %arg4[%c0_4, %c0_5, %c0_6] : memref<1x128x512xf32, #tpu.memory_space<vmem>>, vector<1x128x512xf32>
    %5 = vector.shape_cast %4 : vector<1x128x512xf32> to vector<128x512xf32>
    %6 = vector.shape_cast %3 : vector<128x512xf32> to vector<1x128x512xf32>
    tpu.vector_store %arg4[%c0_4, %c0_5, %c0_6], %6 {strides = array<i32>} : memref<1x128x512xf32, #tpu.memory_space<vmem>>, vector<1x128x512xf32>,
    return
  }
  func.func @transform_0(%arg0: i32, %arg1: i32) -> (i32, i32, i32) {
    %c0_i32 = arith.constant 0 : i32
    %c0_i32_0 = arith.constant 0 : i32
    return %arg0, %arg1, %c0_i32 : i32, i32, i32
  }
  func.func @transform_1(%arg0: i32, %arg1: i32) -> (i32, i32) {
    %c0_i32 = arith.constant 0 : i32
    %c0_i32_0 = arith.constant 0 : i32
    %c0_i32_1 = arith.constant 0 : i32
    return %c0_i32, %c0_i32_0 : i32, i32
  }
  func.func @transform_2(%arg0: i32, %arg1: i32) -> (i32, i32, i32) {
    %c0_i32 = arith.constant 0 : i32
    %c0_i32_0 = arith.constant 0 : i32
    return %arg0, %arg1, %c0_i32 : i32, i32, i32
  }
}

module attributes {stable_mosaic.version = 11 : i64} {
  func.func @_inorm_stats_kernel(%arg0: i32, %arg1: i32, %arg2: memref<1x512x32xf32, #tpu.memory_space<vmem>>, %arg3: memref<1x1x32xf32, #tpu.memory_space<vmem>>, %arg4: memref<1x1x32xf32, #tpu.memory_space<vmem>>) attributes {dimension_semantics = [#tpu.dimension_semantics<parallel>, #tpu.dimension_semantics<arbitrary>], iteration_bounds = array<i64: 2, 2>, scalar_prefetch = 0 : i64, scratch_operands = 0 : i64, tpu.core_type = #tpu.core_type<tc>, window_params = [{transform_indices = @transform_0, window_bounds = array<i64: 1, 512, 32>}, {transform_indices = @transform_1, window_bounds = array<i64: 1, 1, 32>}, {transform_indices = @transform_2, window_bounds = array<i64: 1, 1, 32>}]} {
    %c0_i32 = arith.constant 0 : i32
    %0 = arith.cmpi eq, %arg1, %c0_i32 : i32
    %1 = arith.extui %0 : i1 to i32
    %c0_i32_0 = arith.constant 0 : i32
    %2 = arith.cmpi ne, %1, %c0_i32_0 : i32
    scf.if %2 {
      %cst_16 = arith.constant 0.000000e+00 : f32
      %22 = vector.broadcast %cst_16 : f32 to vector<1x32xf32>
      %c0_17 = arith.constant 0 : index
      %c0_18 = arith.constant 0 : index
      %c0_19 = arith.constant 0 : index
      %23 = vector.load %arg3[%c0_17, %c0_18, %c0_19] : memref<1x1x32xf32, #tpu.memory_space<vmem>>, vector<1x1x32xf32>
      %24 = vector.shape_cast %23 : vector<1x1x32xf32> to vector<1x32xf32>
      %25 = vector.shape_cast %22 : vector<1x32xf32> to vector<1x1x32xf32>
      tpu.vector_store %arg3[%c0_17, %c0_18, %c0_19], %25 {strides = array<i32>} : memref<1x1x32xf32, #tpu.memory_space<vmem>>, vector<1x1x32xf32>,
      %cst_20 = arith.constant 0.000000e+00 : f32
      %26 = vector.broadcast %cst_20 : f32 to vector<1x32xf32>
      %c0_21 = arith.constant 0 : index
      %c0_22 = arith.constant 0 : index
      %c0_23 = arith.constant 0 : index
      %27 = vector.load %arg4[%c0_21, %c0_22, %c0_23] : memref<1x1x32xf32, #tpu.memory_space<vmem>>, vector<1x1x32xf32>
      %28 = vector.shape_cast %27 : vector<1x1x32xf32> to vector<1x32xf32>
      %29 = vector.shape_cast %26 : vector<1x32xf32> to vector<1x1x32xf32>
      tpu.vector_store %arg4[%c0_21, %c0_22, %c0_23], %29 {strides = array<i32>} : memref<1x1x32xf32, #tpu.memory_space<vmem>>, vector<1x1x32xf32>,
    } else {
    }
    %c0 = arith.constant 0 : index
    %c0_1 = arith.constant 0 : index
    %c0_2 = arith.constant 0 : index
    %3 = vector.load %arg2[%c0, %c0_1, %c0_2] : memref<1x512x32xf32, #tpu.memory_space<vmem>>, vector<1x512x32xf32>
    %4 = vector.shape_cast %3 : vector<1x512x32xf32> to vector<512x32xf32>
    %c0_3 = arith.constant 0 : index
    %c0_4 = arith.constant 0 : index
    %c0_5 = arith.constant 0 : index
    %5 = vector.load %arg3[%c0_3, %c0_4, %c0_5] : memref<1x1x32xf32, #tpu.memory_space<vmem>>, vector<1x1x32xf32>
    %6 = vector.shape_cast %5 : vector<1x1x32xf32> to vector<1x32xf32>
    %cst = arith.constant dense<0.000000e+00> : vector<32xf32>
    %7 = vector.multi_reduction <add>, %4, %cst [0] : vector<512x32xf32> to vector<32xf32>
    %8 = vector.shape_cast %7 : vector<32xf32> to vector<1x32xf32>
    %9 = arith.addf %6, %8 : vector<1x32xf32>
    %c0_6 = arith.constant 0 : index
    %c0_7 = arith.constant 0 : index
    %c0_8 = arith.constant 0 : index
    %10 = vector.load %arg3[%c0_6, %c0_7, %c0_8] : memref<1x1x32xf32, #tpu.memory_space<vmem>>, vector<1x1x32xf32>
    %11 = vector.shape_cast %10 : vector<1x1x32xf32> to vector<1x32xf32>
    %12 = vector.shape_cast %9 : vector<1x32xf32> to vector<1x1x32xf32>
    tpu.vector_store %arg3[%c0_6, %c0_7, %c0_8], %12 {strides = array<i32>} : memref<1x1x32xf32, #tpu.memory_space<vmem>>, vector<1x1x32xf32>,
    %c0_9 = arith.constant 0 : index
    %c0_10 = arith.constant 0 : index
    %c0_11 = arith.constant 0 : index
    %13 = vector.load %arg4[%c0_9, %c0_10, %c0_11] : memref<1x1x32xf32, #tpu.memory_space<vmem>>, vector<1x1x32xf32>
    %14 = vector.shape_cast %13 : vector<1x1x32xf32> to vector<1x32xf32>
    %15 = arith.mulf %4, %4 : vector<512x32xf32>
    %cst_12 = arith.constant dense<0.000000e+00> : vector<32xf32>
    %16 = vector.multi_reduction <add>, %15, %cst_12 [0] : vector<512x32xf32> to vector<32xf32>
    %17 = vector.shape_cast %16 : vector<32xf32> to vector<1x32xf32>
    %18 = arith.addf %14, %17 : vector<1x32xf32>
    %c0_13 = arith.constant 0 : index
    %c0_14 = arith.constant 0 : index
    %c0_15 = arith.constant 0 : index
    %19 = vector.load %arg4[%c0_13, %c0_14, %c0_15] : memref<1x1x32xf32, #tpu.memory_space<vmem>>, vector<1x1x32xf32>
    %20 = vector.shape_cast %19 : vector<1x1x32xf32> to vector<1x32xf32>
    %21 = vector.shape_cast %18 : vector<1x32xf32> to vector<1x1x32xf32>
    tpu.vector_store %arg4[%c0_13, %c0_14, %c0_15], %21 {strides = array<i32>} : memref<1x1x32xf32, #tpu.memory_space<vmem>>, vector<1x1x32xf32>,
    return
  }
  func.func @transform_0(%arg0: i32, %arg1: i32) -> (i32, i32, i32) {
    %c0_i32 = arith.constant 0 : i32
    %c0_i32_0 = arith.constant 0 : i32
    return %arg0, %arg1, %c0_i32 : i32, i32, i32
  }
  func.func @transform_1(%arg0: i32, %arg1: i32) -> (i32, i32, i32) {
    %c0_i32 = arith.constant 0 : i32
    %c0_i32_0 = arith.constant 0 : i32
    %c0_i32_1 = arith.constant 0 : i32
    return %arg0, %c0_i32, %c0_i32_0 : i32, i32, i32
  }
  func.func @transform_2(%arg0: i32, %arg1: i32) -> (i32, i32, i32) {
    %c0_i32 = arith.constant 0 : i32
    %c0_i32_0 = arith.constant 0 : i32
    %c0_i32_1 = arith.constant 0 : i32
    return %arg0, %c0_i32, %c0_i32_0 : i32, i32, i32
  }
}

module attributes {stable_mosaic.version = 11 : i64} {
  func.func @_inorm_relu_kernel(%arg0: i32, %arg1: i32, %arg2: memref<1x512x32xf32, #tpu.memory_space<vmem>>, %arg3: memref<1x1x32xf32, #tpu.memory_space<vmem>>, %arg4: memref<1x1x32xf32, #tpu.memory_space<vmem>>, %arg5: memref<1x512x32xf32, #tpu.memory_space<vmem>>) attributes {dimension_semantics = [#tpu.dimension_semantics<parallel>, #tpu.dimension_semantics<parallel>], iteration_bounds = array<i64: 2, 2>, scalar_prefetch = 0 : i64, scratch_operands = 0 : i64, tpu.core_type = #tpu.core_type<tc>, window_params = [{transform_indices = @transform_0, window_bounds = array<i64: 1, 512, 32>}, {transform_indices = @transform_1, window_bounds = array<i64: 1, 1, 32>}, {transform_indices = @transform_2, window_bounds = array<i64: 1, 1, 32>}, {transform_indices = @transform_3, window_bounds = array<i64: 1, 512, 32>}]} {
    %c0 = arith.constant 0 : index
    %c0_0 = arith.constant 0 : index
    %c0_1 = arith.constant 0 : index
    %0 = vector.load %arg2[%c0, %c0_0, %c0_1] : memref<1x512x32xf32, #tpu.memory_space<vmem>>, vector<1x512x32xf32>
    %1 = vector.shape_cast %0 : vector<1x512x32xf32> to vector<512x32xf32>
    %c0_2 = arith.constant 0 : index
    %c0_3 = arith.constant 0 : index
    %c0_4 = arith.constant 0 : index
    %2 = vector.load %arg3[%c0_2, %c0_3, %c0_4] : memref<1x1x32xf32, #tpu.memory_space<vmem>>, vector<1x1x32xf32>
    %3 = vector.shape_cast %2 : vector<1x1x32xf32> to vector<1x32xf32>
    %4 = vector.broadcast %3 : vector<1x32xf32> to vector<512x32xf32>
    %5 = arith.subf %1, %4 : vector<512x32xf32>
    %c0_5 = arith.constant 0 : index
    %c0_6 = arith.constant 0 : index
    %c0_7 = arith.constant 0 : index
    %6 = vector.load %arg4[%c0_5, %c0_6, %c0_7] : memref<1x1x32xf32, #tpu.memory_space<vmem>>, vector<1x1x32xf32>
    %7 = vector.shape_cast %6 : vector<1x1x32xf32> to vector<1x32xf32>
    %8 = vector.broadcast %7 : vector<1x32xf32> to vector<512x32xf32>
    %9 = arith.mulf %5, %8 : vector<512x32xf32>
    %cst = arith.constant 0.000000e+00 : f32
    %10 = vector.broadcast %cst : f32 to vector<512x32xf32>
    %11 = arith.maximumf %9, %10 : vector<512x32xf32>
    %c0_8 = arith.constant 0 : index
    %c0_9 = arith.constant 0 : index
    %c0_10 = arith.constant 0 : index
    %12 = vector.load %arg5[%c0_8, %c0_9, %c0_10] : memref<1x512x32xf32, #tpu.memory_space<vmem>>, vector<1x512x32xf32>
    %13 = vector.shape_cast %12 : vector<1x512x32xf32> to vector<512x32xf32>
    %14 = vector.shape_cast %11 : vector<512x32xf32> to vector<1x512x32xf32>
    tpu.vector_store %arg5[%c0_8, %c0_9, %c0_10], %14 {strides = array<i32>} : memref<1x512x32xf32, #tpu.memory_space<vmem>>, vector<1x512x32xf32>,
    return
  }
  func.func @transform_0(%arg0: i32, %arg1: i32) -> (i32, i32, i32) {
    %c0_i32 = arith.constant 0 : i32
    %c0_i32_0 = arith.constant 0 : i32
    return %arg0, %arg1, %c0_i32 : i32, i32, i32
  }
  func.func @transform_1(%arg0: i32, %arg1: i32) -> (i32, i32, i32) {
    %c0_i32 = arith.constant 0 : i32
    %c0_i32_0 = arith.constant 0 : i32
    %c0_i32_1 = arith.constant 0 : i32
    return %arg0, %c0_i32, %c0_i32_0 : i32, i32, i32
  }
  func.func @transform_2(%arg0: i32, %arg1: i32) -> (i32, i32, i32) {
    %c0_i32 = arith.constant 0 : i32
    %c0_i32_0 = arith.constant 0 : i32
    %c0_i32_1 = arith.constant 0 : i32
    return %arg0, %c0_i32, %c0_i32_0 : i32, i32, i32
  }
  func.func @transform_3(%arg0: i32, %arg1: i32) -> (i32, i32, i32) {
    %c0_i32 = arith.constant 0 : i32
    %c0_i32_0 = arith.constant 0 : i32
    return %arg0, %arg1, %c0_i32 : i32, i32, i32
  }
}

</mosaic_0001>

<bundles_post_ra>
// kernel: upsample_forward.3
= control target key start
LH: loop header
LB: loop body
LE: loop exit
PB: predicated region body
PF: predicated region fallthrough
CT: control target
= control target key end

     0   :  { %s932_s9 = smov 0   ;;  %s934_s10 = smov 0   ;;  %s1145_s0 = inlined_call_operand.vmem [shape: bf16[2,256,64], index: 0, kind: input, shape index: {}]   ;;  %s1146_s1 = inlined_call_operand.vmem [shape: bf16[64,512], index: 1, kind: input, shape index: {}]   ;;  %s1147_s2 = inlined_call_operand.vmem [shape: f32[2,256,512], index: 2, kind: output, shape index: {}]  }
   0x1   :  { %s936_s11 = smov 0   ;;  %s938_s12 = smov 0  }
   0x2   :  { %s940_s13 = smov 0  }
   0x3 LB: > { %s21_s14 = sadd.s32 1, %s906_s11  ;;  %s24_s15 = sadd.s32 1, %s910_s12  ;;  %s914_s13 = sphi %s940_s13, %s12_s13   ;;  %s910_s12 = sphi %s938_s12, %s1151_s12   ;;  %s906_s11 = sphi %s936_s11, %s1150_s11   ;;  %s902_s10 = sphi %s934_s10, %s1149_s10   ;;  %s898_s9 = sphi %s932_s9, %s1148_s9  }
   0x4   : > { %p22_p0 = scmp.ge.s32.totalorder %s21_s14, 2  ;;  %p753_p1 = scmp.ge.s32.totalorder %s914_s13, 1 }
   0x5   : > { %p133_p2 = scmp.lt.s32.totalorder %s914_s13, 5 }
   0x6   : > { %s1153_s14 = smov (%p22_p0, %s21_s14), 0  ;;  %s1155_s15 = smov (!%p22_p0, %s24_s15), %s910_s12 }
   0x7   : > { %p134_p3 = pnand %p753_p1, %p133_p2  ;;  %p26_p4 = scmp.ge.s32.totalorder %s1155_s15, 2 }
   0x8   : > { %s754_s18 = sshll.u32 (!%p134_p3), %s898_s9, 4  ;;  %p165_p5 = scmp.lt.s32.totalorder (!%p134_p3), %s902_s10, 1 }
   0x9   : > { %s1157_s15 = smov (%p26_p4, %s1155_s15), 0  ;;  %137 = sbr.rel (%p134_p3) target bundleno = 288 (0x120), region = 28 }
   0xa   : > { %p167_p6 = scmp.lt.s32.totalorder (!%p134_p3), %s754_s18, 31 }
   0xe   : > { %v844_v0 = vld [vmem:[%s1146_s1 + $0x64] ss:$16 sps:$4 sm:$0xff]   ;;  %v846_v1 = vld [vmem:[%s1146_s1 + $0x6c] ss:$16 sps:$4 sm:$0xff]   ;;  %v916_v2 = vmov 0   ;;  %s1159_s10 = smov (!%p165_p5, %s902_s10), 1 }
   0xf   : > { %395 = vmatprep.mubr.bf16.mxu0 %v916_v2  ;;  %508 = vmatprep.mubr.bf16.mxu1 %v916_v2  ;;  %v848_v3 = vld [vmem:[%s1146_s1 + $0x60] ss:$16 sps:$4 sm:$0xff]   ;;  %v849_v4 = vld [vmem:[%s1146_s1 + $0x68] ss:$16 sps:$4 sm:$0xff]   ;;  %v850_v5 = vld [vmem:[%s1146_s1 + $0x44] ss:$16 sps:$4 sm:$0xff]  }
  0x10   : > { %371 = vmatprep.subr.bf16.mxu0 %v844_v0  ;;  %484 = vmatprep.subr.bf16.mxu1 %v846_v1  ;;  %v852_v6 = vld [vmem:[%s1146_s1 + $0x4c] ss:$16 sps:$4 sm:$0xff]   ;;  %v854_v7 = vld [vmem:[%s1146_s1 + $0x40] ss:$16 sps:$4 sm:$0xff]   ;;  %s1161_s18 = smov (!%p167_p6, %s754_s18), 31  ;;  %s755_s5 = sshll.u32 %s1159_s10, 5 }
  0x11   : > { %372 = vmatpush1.bf16.msra.mxu0 %v848_v3  ;;  %485 = vmatpush1.bf16.msra.mxu1 %v849_v4  ;;  %v855_v8 = vld [vmem:[%s1146_s1 + $0x48] ss:$16 sps:$4 sm:$0xff]   ;;  %s759_s6 = sshll.u32 %s1159_s10, 7  ;;  %v856_v9 = vld [vmem:[%s1146_s1 + $0x24] ss:$16 sps:$4 sm:$0xff]   ;;  %s170_s9 = sadd.s32 %s755_s5, %s1161_s18  ;;  %vm338_vm0 = vcmask 523264  }
  0x12   : > { %373 = vmatprep.subr.bf16.mxu0 %v850_v5  ;;  %486 = vmatprep.subr.bf16.mxu1 %v852_v6  ;;  %s758_s16 = sshll.u32 %s1161_s18, 2  ;;  %v858_v10 = vld [vmem:[%s1146_s1 + $0x2c] ss:$16 sps:$4 sm:$0xff]   ;;  %v860_v11 = vld [vmem:[%s1146_s1 + $0x20] ss:$16 sps:$4 sm:$0xff]   ;;  %s756_s18 = sshll.u32 %s170_s9, 2 }
  0x13   : > { %v861_v12 = vld [vmem:[%s1146_s1 + $0x28] ss:$16 sps:$4 sm:$0xff]   ;;  %s1003_s10 = sadd.s32 %s759_s6, %s758_s16  ;;  %v862_v13 = vld [vmem:[%s1146_s1 + $0x4] ss:$16 sps:$4 sm:$0xff]   ;;  %v864_v14 = vld [vmem:[%s1146_s1 + $0xc] ss:$16 sps:$4 sm:$0xff]   ;;  %s1014_s30 = scalar_lea.vmem %s1145_s0, %s756_s18 }
  0x14   : > { %v866_v15 = vld [vmem:[%s1146_s1] ss:$16 sps:$4 sm:$0xff]   ;;  %v867_v16 = vld [vmem:[%s1146_s1 + $0x8] ss:$16 sps:$4 sm:$0xff]   ;;  %s760_s7 = sshll.u32 %s1003_s10, 3 }
  0x15   : > { %374 = vmatpush1.bf16.msra.mxu0 %v854_v7  ;;  %487 = vmatpush1.bf16.msra.mxu1 %v855_v8  ;;  %v868_v17 = vld [vmem:[%s1014_s30] sm:$0xff]   ;;  %v869_v18 = vld [vmem:[%s1014_s30 + $0x8] sm:$0xff]   ;;  %v870_v19 = vld [vmem:[%s1014_s30 + $0x10] sm:$0xff]   ;;  %s1064_s16 = scalar_lea.vmem %s1147_s2, %s760_s7 }
  0x16   : > { %375 = vmatprep.subr.bf16.mxu0 %v856_v9  ;;  %488 = vmatprep.subr.bf16.mxu1 %v858_v10  ;;  %v871_v20 = vld [vmem:[%s1014_s30 + $0x18] sm:$0xff]   ;;  %v872_v21 = vld [vmem:[%s1014_s30 + $0x20] sm:$0xff]   ;;  %v873_v22 = vld [vmem:[%s1014_s30 + $0x28] sm:$0xff]  }
  0x17   : > { %v874_v23 = vld [vmem:[%s1014_s30 + $0x30] sm:$0xff]   ;;  %v875_v24 = vld [vmem:[%s1014_s30 + $0x38] sm:$0xff]  }
  0x19   : > { %376 = vmatpush1.bf16.msra.mxu0 %v860_v11  ;;  %489 = vmatpush1.bf16.msra.mxu1 %v861_v12 }
  0x1a   : > { %377 = vmatprep.subr.bf16.mxu0 %v862_v13  ;;  %490 = vmatprep.subr.bf16.mxu1 %v864_v14 }
  0x1d   : > { %378 = vmatpush1.bf16.msra.mxu0 %v866_v15  ;;  %491 = vmatpush1.bf16.msra.mxu1 %v867_v16 }
  0x20   : > { %785 = vmatmul.mubr.msk.bf16.vlgmr.msra.gmra.mxu0 %vm338_vm0, %v868_v17  ;;  %793 = vmatmul.mubr.msk.bf16.vlgmr.msra.gmra.mxu1 %vm338_vm0, %v868_v17 }
  0x21   : > { %405 = vmatprep.mubr.bf16.mxu0 %v916_v2  ;;  %518 = vmatprep.mubr.bf16.mxu1 %v916_v2 }
  0x28   : > { %786 = vmatmul.mubr.msk.bf16.gmra.mxu0 %vm338_vm0, %v869_v18  ;;  %794 = vmatmul.mubr.msk.bf16.gmra.mxu1 %vm338_vm0, %v869_v18 }
  0x29   : > { %415 = vmatprep.mubr.bf16.mxu0 %v916_v2  ;;  %528 = vmatprep.mubr.bf16.mxu1 %v916_v2 }
  0x30   : > { %787 = vmatmul.mubr.msk.bf16.gmra.mxu0 %vm338_vm0, %v870_v19  ;;  %795 = vmatmul.mubr.msk.bf16.gmra.mxu1 %vm338_vm0, %v870_v19 }
  0x31   : > { %425 = vmatprep.mubr.bf16.mxu0 %v916_v2  ;;  %538 = vmatprep.mubr.bf16.mxu1 %v916_v2 }
  0x38   : > { %788 = vmatmul.mubr.msk.bf16.gmra.mxu0 %vm338_vm0, %v871_v20  ;;  %796 = vmatmul.mubr.msk.bf16.gmra.mxu1 %vm338_vm0, %v871_v20 }
  0x39   : > { %435 = vmatprep.mubr.bf16.mxu0 %v916_v2  ;;  %548 = vmatprep.mubr.bf16.mxu1 %v916_v2 }
  0x40   : > { %789 = vmatmul.mubr.msk.bf16.gmra.mxu0 %vm338_vm0, %v872_v21  ;;  %797 = vmatmul.mubr.msk.bf16.gmra.mxu1 %vm338_vm0, %v872_v21 }
  0x41   : > { %445 = vmatprep.mubr.bf16.mxu0 %v916_v2  ;;  %558 = vmatprep.mubr.bf16.mxu1 %v916_v2 }
  0x48   : > { %790 = vmatmul.mubr.msk.bf16.gmra.mxu0 %vm338_vm0, %v873_v22  ;;  %798 = vmatmul.mubr.msk.bf16.gmra.mxu1 %vm338_vm0, %v873_v22 }
  0x49   : > { %455 = vmatprep.mubr.bf16.mxu0 %v916_v2  ;;  %568 = vmatprep.mubr.bf16.mxu1 %v916_v2 }
  0x50   : > { %791 = vmatmul.mubr.msk.bf16.gmra.mxu0 %vm338_vm0, %v874_v23  ;;  %799 = vmatmul.mubr.msk.bf16.gmra.mxu1 %vm338_vm0, %v874_v23 }
  0x51   : > { %465 = vmatprep.mubr.bf16.mxu0 %v916_v2  ;;  %578 = vmatprep.mubr.bf16.mxu1 %v916_v2 }
  0x58   : > { %792 = vmatmul.mubr.msk.bf16.gmra.mxu0 %vm338_vm0, %v875_v24  ;;  %800 = vmatmul.mubr.msk.bf16.gmra.mxu1 %vm338_vm0, %v875_v24 }
  0xe0   : > { %v397_v25 = vpop.f32.mrf.mxu0  ;;  %v510_v26 = vpop.f32.mrf.mxu1 }
  0xe1   : > { %589 = vst [vmem:[%s1064_s16] sm:$0xff] %v397_v25  ;;  %591 = vst [vmem:[%s1064_s16 + $0x10] sm:$0xff] %v510_v26 }
  0xe2   : > { %v399_v27 = vpop.f32.mrf.mxu0  ;;  %v512_v28 = vpop.f32.mrf.mxu1 }
  0xe3   : > { %590 = vst [vmem:[%s1064_s16 + $0x8] sm:$0xff] %v399_v27  ;;  %592 = vst [vmem:[%s1064_s16 + $0x18] sm:$0xff] %v512_v28 }
  0xe4   : > { %v401_v29 = vpop.f32.mrf.mxu0  ;;  %v514_v30 = vpop.f32.mrf.mxu1 }
  0xe5   : > { %593 = vst [vmem:[%s1064_s16 + $0x20] sm:$0xff] %v401_v29  ;;  %595 = vst [vmem:[%s1064_s16 + $0x30] sm:$0xff] %v514_v30 }
  0xe6   : > { %v403_v31 = vpop.f32.mrf.mxu0  ;;  %v516_v32 = vpop.f32.mrf.mxu1 }
  0xe7   : > { %594 = vst [vmem:[%s1064_s16 + $0x28] sm:$0xff] %v403_v31  ;;  %596 = vst [vmem:[%s1064_s16 + $0x38] sm:$0xff] %v516_v32 }
  0xe8   : > { %v407_v33 = vpop.f32.mrf.mxu0  ;;  %v520_v34 = vpop.f32.mrf.mxu1 }
  0xe9   : > { %597 = vst [vmem:[%s1064_s16 + $0x40] sm:$0xff] %v407_v33  ;;  %599 = vst [vmem:[%s1064_s16 + $0x50] sm:$0xff] %v520_v34 }
  0xea   : > { %v409_v35 = vpop.f32.mrf.mxu0  ;;  %v522_v36 = vpop.f32.mrf.mxu1 }
  0xeb   : > { %598 = vst [vmem:[%s1064_s16 + $0x48] sm:$0xff] %v409_v35  ;;  %600 = vst [vmem:[%s1064_s16 + $0x58] sm:$0xff] %v522_v36 }
  0xec   : > { %v411_v37 = vpop.f32.mrf.mxu0  ;;  %v524_v38 = vpop.f32.mrf.mxu1 }
  0xed   : > { %601 = vst [vmem:[%s1064_s16 + $0x60] sm:$0xff] %v411_v37  ;;  %603 = vst [vmem:[%s1064_s16 + $0x70] sm:$0xff] %v524_v38 }
  0xee   : > { %v413_v39 = vpop.f32.mrf.mxu0  ;;  %v526_v40 = vpop.f32.mrf.mxu1 }
  0xef   : > { %602 = vst [vmem:[%s1064_s16 + $0x68] sm:$0xff] %v413_v39  ;;  %604 = vst [vmem:[%s1064_s16 + $0x78] sm:$0xff] %v526_v40 }
  0xf0   : > { %v417_v41 = vpop.f32.mrf.mxu0  ;;  %v530_v42 = vpop.f32.mrf.mxu1 }
  0xf1   : > { %605 = vst [vmem:[%s1064_s16 + $0x80] sm:$0xff] %v417_v41  ;;  %607 = vst [vmem:[%s1064_s16 + $0x90] sm:$0xff] %v530_v42 }
  0xf2   : > { %v419_v43 = vpop.f32.mrf.mxu0  ;;  %v532_v44 = vpop.f32.mrf.mxu1 }
  0xf3   : > { %606 = vst [vmem:[%s1064_s16 + $0x88] sm:$0xff] %v419_v43  ;;  %608 = vst [vmem:[%s1064_s16 + $0x98] sm:$0xff] %v532_v44 }
  0xf4   : > { %v421_v45 = vpop.f32.mrf.mxu0  ;;  %v534_v46 = vpop.f32.mrf.mxu1 }
  0xf5   : > { %609 = vst [vmem:[%s1064_s16 + $0xa0] sm:$0xff] %v421_v45  ;;  %611 = vst [vmem:[%s1064_s16 + $0xb0] sm:$0xff] %v534_v46 }
  0xf6   : > { %v423_v47 = vpop.f32.mrf.mxu0  ;;  %v536_v48 = vpop.f32.mrf.mxu1 }
  0xf7   : > { %610 = vst [vmem:[%s1064_s16 + $0xa8] sm:$0xff] %v423_v47  ;;  %612 = vst [vmem:[%s1064_s16 + $0xb8] sm:$0xff] %v536_v48 }
  0xf8   : > { %v427_v49 = vpop.f32.mrf.mxu0  ;;  %v540_v50 = vpop.f32.mrf.mxu1 }
  0xf9   : > { %613 = vst [vmem:[%s1064_s16 + $0xc0] sm:$0xff] %v427_v49  ;;  %615 = vst [vmem:[%s1064_s16 + $0xd0] sm:$0xff] %v540_v50 }
  0xfa   : > { %v429_v51 = vpop.f32.mrf.mxu0  ;;  %v542_v52 = vpop.f32.mrf.mxu1 }
  0xfb   : > { %614 = vst [vmem:[%s1064_s16 + $0xc8] sm:$0xff] %v429_v51  ;;  %616 = vst [vmem:[%s1064_s16 + $0xd8] sm:$0xff] %v542_v52 }
  0xfc   : > { %v431_v53 = vpop.f32.mrf.mxu0  ;;  %v544_v54 = vpop.f32.mrf.mxu1 }
  0xfd   : > { %617 = vst [vmem:[%s1064_s16 + $0xe0] sm:$0xff] %v431_v53  ;;  %619 = vst [vmem:[%s1064_s16 + $0xf0] sm:$0xff] %v544_v54 }
  0xfe   : > { %v433_v55 = vpop.f32.mrf.mxu0  ;;  %v546_v56 = vpop.f32.mrf.mxu1 }
  0xff   : > { %618 = vst [vmem:[%s1064_s16 + $0xe8] sm:$0xff] %v433_v55  ;;  %620 = vst [vmem:[%s1064_s16 + $0xf8] sm:$0xff] %v546_v56 }
 0x100   : > { %v437_v57 = vpop.f32.mrf.mxu0  ;;  %v550_v58 = vpop.f32.mrf.mxu1 }
 0x101   : > { %621 = vst [vmem:[%s1064_s16 + $0x100] sm:$0xff] %v437_v57  ;;  %623 = vst [vmem:[%s1064_s16 + $0x110] sm:$0xff] %v550_v58 }
 0x102   : > { %v439_v59 = vpop.f32.mrf.mxu0  ;;  %v552_v60 = vpop.f32.mrf.mxu1 }
 0x103   : > { %622 = vst [vmem:[%s1064_s16 + $0x108] sm:$0xff] %v439_v59  ;;  %624 = vst [vmem:[%s1064_s16 + $0x118] sm:$0xff] %v552_v60 }
 0x104   : > { %v441_v61 = vpop.f32.mrf.mxu0  ;;  %v554_v62 = vpop.f32.mrf.mxu1 }
 0x105   : > { %625 = vst [vmem:[%s1064_s16 + $0x120] sm:$0xff] %v441_v61  ;;  %627 = vst [vmem:[%s1064_s16 + $0x130] sm:$0xff] %v554_v62 }
 0x106   : > { %v443_v63 = vpop.f32.mrf.mxu0  ;;  %v556_v0 = vpop.f32.mrf.mxu1 }
 0x107   : > { %626 = vst [vmem:[%s1064_s16 + $0x128] sm:$0xff] %v443_v63  ;;  %628 = vst [vmem:[%s1064_s16 + $0x138] sm:$0xff] %v556_v0 }
 0x108   : > { %v447_v1 = vpop.f32.mrf.mxu0  ;;  %v560_v2 = vpop.f32.mrf.mxu1 }
 0x109   : > { %629 = vst [vmem:[%s1064_s16 + $0x140] sm:$0xff] %v447_v1  ;;  %631 = vst [vmem:[%s1064_s16 + $0x150] sm:$0xff] %v560_v2 }
 0x10a   : > { %v449_v3 = vpop.f32.mrf.mxu0  ;;  %v562_v4 = vpop.f32.mrf.mxu1 }
 0x10b   : > { %630 = vst [vmem:[%s1064_s16 + $0x148] sm:$0xff] %v449_v3  ;;  %632 = vst [vmem:[%s1064_s16 + $0x158] sm:$0xff] %v562_v4 }
 0x10c   : > { %v451_v5 = vpop.f32.mrf.mxu0  ;;  %v564_v6 = vpop.f32.mrf.mxu1 }
 0x10d   : > { %633 = vst [vmem:[%s1064_s16 + $0x160] sm:$0xff] %v451_v5  ;;  %635 = vst [vmem:[%s1064_s16 + $0x170] sm:$0xff] %v564_v6 }
 0x10e   : > { %v453_v7 = vpop.f32.mrf.mxu0  ;;  %v566_v8 = vpop.f32.mrf.mxu1 }
 0x10f   : > { %634 = vst [vmem:[%s1064_s16 + $0x168] sm:$0xff] %v453_v7  ;;  %636 = vst [vmem:[%s1064_s16 + $0x178] sm:$0xff] %v566_v8 }
 0x110   : > { %v457_v9 = vpop.f32.mrf.mxu0  ;;  %v570_v10 = vpop.f32.mrf.mxu1 }
 0x111   : > { %637 = vst [vmem:[%s1064_s16 + $0x180] sm:$0xff] %v457_v9  ;;  %639 = vst [vmem:[%s1064_s16 + $0x190] sm:$0xff] %v570_v10 }
 0x112   : > { %v459_v11 = vpop.f32.mrf.mxu0  ;;  %v572_v12 = vpop.f32.mrf.mxu1 }
 0x113   : > { %638 = vst [vmem:[%s1064_s16 + $0x188] sm:$0xff] %v459_v11  ;;  %640 = vst [vmem:[%s1064_s16 + $0x198] sm:$0xff] %v572_v12 }
 0x114   : > { %v461_v13 = vpop.f32.mrf.mxu0  ;;  %v574_v14 = vpop.f32.mrf.mxu1 }
 0x115   : > { %641 = vst [vmem:[%s1064_s16 + $0x1a0] sm:$0xff] %v461_v13  ;;  %643 = vst [vmem:[%s1064_s16 + $0x1b0] sm:$0xff] %v574_v14 }
 0x116   : > { %v463_v15 = vpop.f32.mrf.mxu0  ;;  %v576_v16 = vpop.f32.mrf.mxu1 }
 0x117   : > { %642 = vst [vmem:[%s1064_s16 + $0x1a8] sm:$0xff] %v463_v15  ;;  %644 = vst [vmem:[%s1064_s16 + $0x1b8] sm:$0xff] %v576_v16 }
 0x118   : > { %v467_v17 = vpop.f32.mrf.mxu0  ;;  %v580_v18 = vpop.f32.mrf.mxu1 }
 0x119   : > { %645 = vst [vmem:[%s1064_s16 + $0x1c0] sm:$0xff] %v467_v17  ;;  %647 = vst [vmem:[%s1064_s16 + $0x1d0] sm:$0xff] %v580_v18 }
 0x11a   : > { %v469_v19 = vpop.f32.mrf.mxu0  ;;  %v582_v20 = vpop.f32.mrf.mxu1 }
 0x11b   : > { %646 = vst [vmem:[%s1064_s16 + $0x1c8] sm:$0xff] %v469_v19  ;;  %648 = vst [vmem:[%s1064_s16 + $0x1d8] sm:$0xff] %v582_v20 }
 0x11c   : > { %v471_v21 = vpop.f32.mrf.mxu0  ;;  %v584_v22 = vpop.f32.mrf.mxu1 }
 0x11d   : > { %649 = vst [vmem:[%s1064_s16 + $0x1e0] sm:$0xff] %v471_v21  ;;  %651 = vst [vmem:[%s1064_s16 + $0x1f0] sm:$0xff] %v584_v22 }
 0x11e   : > { %v473_v23 = vpop.f32.mrf.mxu0  ;;  %v586_v24 = vpop.f32.mrf.mxu1 }
 0x11f   : > { %650 = vst [vmem:[%s1064_s16 + $0x1e8] sm:$0xff] %v473_v23  ;;  %652 = vst [vmem:[%s1064_s16 + $0x1f8] sm:$0xff] %v586_v24 }
 0x120 PF: > { %s12_s13 = sadd.s32 1, %s914_s13   ;;  %s1148_s9 = smov %s906_s11 }
 0x121   : > { %p9_p7 = scmp.ge.s32.totalorder %s12_s13, 6   ;;  %s1149_s10 = smov %s910_s12 }
 0x122   : > { %s1150_s11 = smov %s1153_s14  ;;  %s1151_s12 = smov %s1157_s15 }
 0x123   :  { %11 = sbr.rel (!%p9_p7) target bundleno = 3 (0x3), region = 58 }

// kernel: upsample_forward.4
= control target key start
LH: loop header
LB: loop body
LE: loop exit
PB: predicated region body
PF: predicated region fallthrough
CT: control target
= control target key end

     0   :  { %s783_s9 = smov 0   ;;  %s785_s10 = smov 0   ;;  %s1333_s0 = inlined_call_operand.vmem [shape: f32[2,1024,32], index: 0, kind: input, shape index: {}]   ;;  %s1334_s1 = inlined_call_operand.vmem [shape: f32[2,1,32], index: 1, kind: output, shape index: {0}]   ;;  %s1335_s2 = inlined_call_operand.vmem [shape: f32[2,1,32], index: 2, kind: output, shape index: {1}]  }
   0x1   :  { %s787_s11 = smov 0   ;;  %s789_s12 = smov 0  }
   0x2   :  { %s791_s13 = smov 0  }
   0x3 LB: > { %s22_s14 = sadd.s32 1, %s757_s11  ;;  %s25_s15 = sadd.s32 1, %s761_s12  ;;  %s765_s13 = sphi %s791_s13, %s13_s13   ;;  %s761_s12 = sphi %s789_s12, %s1339_s12   ;;  %s757_s11 = sphi %s787_s11, %s1338_s11   ;;  %s753_s10 = sphi %s785_s10, %s1337_s10   ;;  %s749_s9 = sphi %s783_s9, %s1336_s9  }
   0x4   : > { %p23_p0 = scmp.ge.s32.totalorder %s22_s14, 2  ;;  %p679_p1 = scmp.ge.s32.totalorder %s765_s13, 1 }
   0x5   : > { %p134_p2 = scmp.lt.s32.totalorder %s765_s13, 5 }
   0x6   : > { %s1341_s14 = smov (%p23_p0, %s22_s14), 0  ;;  %s1343_s15 = smov (!%p23_p0, %s25_s15), %s761_s12 }
   0x7   : > { %p135_p3 = pnand %p679_p1, %p134_p2  ;;  %p27_p4 = scmp.ge.s32.totalorder %s1343_s15, 2 }
   0x8   : > { %s680_s16 = sshll.u32 (!%p135_p3), %s749_s9, 6  ;;  %p162_p5 = scmp.lt.s32.totalorder (!%p135_p3), %s753_s10, 1 }
   0x9   : > { %s1345_s15 = smov (%p27_p4, %s1343_s15), 0  ;;  %138 = sbr.rel (%p135_p3) target bundleno = 188 (0xbc), region = 24 }
   0xa   : > { %p164_p6 = scmp.lt.s32.totalorder (!%p135_p3), %s680_s16, 127  ;;  %p683_p7 = scmp.ne.s32.totalorder (!%p135_p3), %s749_s9, 0 }
   0xe   : > { %s1347_s10 = smov (!%p162_p5, %s753_s10), 1  ;;  %s1349_s16 = smov (!%p164_p6, %s680_s16), 127 }
   0xf   : > { %s681_s17 = sshll.u32 %s1347_s10, 7  ;;  %s816_s20 = scalar_lea.vmem %s1334_s1, %s1347_s10 }
  0x10   : > { %s167_s21 = sadd.s32 %s681_s17, %s1349_s16  ;;  %s821_s24 = scalar_lea.vmem %s1335_s2, %s1347_s10 }
  0x11   : > { %s682_s25 = sshll.u32 %s167_s21, 3  ;;  %180 = sbr.rel (%p683_p7) target bundleno = 24 (0x18), region = 28 }
  0x12   : > { %s826_s28 = scalar_lea.vmem %s1333_s0, %s682_s25 }
  0x16   : > { %vm181_vm0 = vcmask 253952   ;;  %v767_v0 = vmov 0.0  }
  0x17   : > { %182 = vst.msk [vmem:[%s816_s20] sm:$0x1] %vm181_vm0, %v767_v0  ;;  %183 = vst.msk [vmem:[%s821_s24] sm:$0x1] %vm181_vm0, %v767_v0 }
  0x18 PF: > { %v184_v1 = vld [vmem:[%s826_s28] sm:$0xff]  ;;  %v185_v2 = vld [vmem:[%s826_s28 + $0x8] sm:$0xff]  ;;  %v186_v3 = vld [vmem:[%s826_s28 + $0x10] sm:$0xff]  ;;  %vm249_vm1 = vcmask 261120   ;;  %vm384_vm2 = vcmask 253952  }
  0x19   : > { %v250_v4 = vsel %vm249_vm1, %v184_v1, 0.0  ;;  %v251_v5 = vsel %vm249_vm1, %v185_v2, 0.0  ;;  %v253_v6 = vsel %vm249_vm1, %v186_v3, 0.0  ;;  %v187_v7 = vld [vmem:[%s826_s28 + $0x18] sm:$0xff]  ;;  %v188_v10 = vld [vmem:[%s826_s28 + $0x20] sm:$0xff]  ;;  %v189_v13 = vld [vmem:[%s826_s28 + $0x28] sm:$0xff]  ;;  %v387_v55 = vmul.f32 %v184_v1, %v184_v1 }
  0x1a   : > { %v252_v8 = vadd.f32 %v251_v5, %v250_v4  ;;  %v255_v9 = vsel %vm249_vm1, %v187_v7, 0.0  ;;  %v257_v12 = vsel %vm249_vm1, %v188_v10, 0.0  ;;  %v259_v15 = vsel %vm249_vm1, %v189_v13, 0.0  ;;  %v843_v16 = vld [vmem:[%s826_s28 + $0x30] sm:$0xff]  ;;  %v848_v19 = vld [vmem:[%s826_s28 + $0x38] sm:$0xff]  ;;  %v853_v22 = vld [vmem:[%s826_s28 + $0x40] sm:$0xff] }
  0x1b   : > { %v261_v18 = vsel %vm249_vm1, %v843_v16, 0.0  ;;  %v263_v21 = vsel %vm249_vm1, %v848_v19, 0.0  ;;  %v265_v24 = vsel %vm249_vm1, %v853_v22, 0.0  ;;  %v858_v25 = vld [vmem:[%s826_s28 + $0x48] sm:$0xff]  ;;  %v863_v28 = vld [vmem:[%s826_s28 + $0x50] sm:$0xff]  ;;  %v868_v31 = vld [vmem:[%s826_s28 + $0x58] sm:$0xff]  ;;  %v388_v58 = vmul.f32 %v185_v2, %v185_v2 }
  0x1c   : > { %v254_v11 = vadd.f32 %v253_v6, %v252_v8  ;;  %v267_v27 = vsel %vm249_vm1, %v858_v25, 0.0  ;;  %v269_v30 = vsel %vm249_vm1, %v863_v28, 0.0  ;;  %v271_v33 = vsel %vm249_vm1, %v868_v31, 0.0  ;;  %v873_v34 = vld [vmem:[%s826_s28 + $0x60] sm:$0xff]  ;;  %v878_v37 = vld [vmem:[%s826_s28 + $0x68] sm:$0xff]  ;;  %v883_v40 = vld [vmem:[%s826_s28 + $0x70] sm:$0xff] }
  0x1d   : > { %v273_v36 = vsel %vm249_vm1, %v873_v34, 0.0  ;;  %v275_v39 = vsel %vm249_vm1, %v878_v37, 0.0  ;;  %v277_v42 = vsel %vm249_vm1, %v883_v40, 0.0  ;;  %v888_v43 = vld [vmem:[%s826_s28 + $0x78] sm:$0xff]  ;;  %v893_v46 = vld [vmem:[%s826_s28 + $0x80] sm:$0xff]  ;;  %v898_v49 = vld [vmem:[%s826_s28 + $0x88] sm:$0xff]  ;;  %v389_v59 = vmul.f32 %v186_v3, %v186_v3 }
  0x1e   : > { %v256_v14 = vadd.f32 %v255_v9, %v254_v11  ;;  %v279_v45 = vsel %vm249_vm1, %v888_v43, 0.0  ;;  %v281_v48 = vsel %vm249_vm1, %v893_v46, 0.0  ;;  %v283_v51 = vsel %vm249_vm1, %v898_v49, 0.0  ;;  %v903_v52 = vld [vmem:[%s826_s28 + $0x90] sm:$0xff]  ;;  %v908_v56 = vld [vmem:[%s826_s28 + $0x98] sm:$0xff]  ;;  %v913_v61 = vld [vmem:[%s826_s28 + $0xa0] sm:$0xff] }
  0x1f   : > { %v285_v54 = vsel %vm249_vm1, %v903_v52, 0.0  ;;  %v287_v60 = vsel %vm249_vm1, %v908_v56, 0.0  ;;  %v390_v63 = vmul.f32 %v187_v7, %v187_v7  ;;  %v289_v0 = vsel %vm249_vm1, %v913_v61, 0.0  ;;  %v919_v1 = vld [vmem:[%s826_s28 + $0xa8] sm:$0xff]  ;;  %v926_v7 = vld [vmem:[%s826_s28 + $0xb0] sm:$0xff] }
  0x20   : > { %v258_v17 = vadd.f32 %v257_v12, %v256_v14  ;;  %v451_v4 = vsel %vm249_vm1, %v387_v55, 0.0  ;;  %v391_v6 = vmul.f32 %v188_v10, %v188_v10  ;;  %v452_v2 = vsel %vm249_vm1, %v388_v58, 0.0 }
  0x21   : > { %v454_v3 = vsel %vm249_vm1, %v389_v59, 0.0  ;;  %v291_v8 = vsel %vm249_vm1, %v919_v1, 0.0  ;;  %v453_v9 = vadd.f32 %v452_v2, %v451_v4  ;;  %v392_v12 = vmul.f32 %v189_v13, %v189_v13 }
  0x22   : > { %v260_v20 = vadd.f32 %v259_v15, %v258_v17  ;;  %v456_v14 = vsel %vm249_vm1, %v390_v63, 0.0  ;;  %v293_v15 = vsel %vm249_vm1, %v926_v7, 0.0  ;;  %v932_v17 = vld [vmem:[%s826_s28 + $0xb8] sm:$0xff]  ;;  %v399_v63 = vmul.f32 %v873_v34, %v873_v34 }
  0x23   : > { %v455_v10 = vadd.f32 %v454_v3, %v453_v9  ;;  %v400_v2 = vmul.f32 %v878_v37, %v878_v37  ;;  %v996_v9 = vld [vmem:[%s826_s28 + $0xf8] sm:$0xff] }
  0x24   : > { %v262_v23 = vadd.f32 %v261_v18, %v260_v20  ;;  %v393_v20 = vmul.f32 %v843_v16, %v843_v16 }
  0x25   : > { %v457_v13 = vadd.f32 %v456_v14, %v455_v10  ;;  %v474_v14 = vsel %vm249_vm1, %v399_v63, 0.0  ;;  %v1004_v10 = vld [vmem:[%s826_s28 + $0x100] sm:$0xff]  ;;  %v408_v63 = vmul.f32 %v919_v1, %v919_v1 }
  0x26   : > { %v264_v26 = vadd.f32 %v263_v21, %v262_v23  ;;  %v458_v21 = vsel %vm249_vm1, %v391_v6, 0.0  ;;  %v295_v23 = vsel %vm249_vm1, %v932_v17, 0.0 }
  0x27   : > { %v459_v16 = vadd.f32 %v458_v21, %v457_v13  ;;  %v476_v21 = vsel %vm249_vm1, %v400_v2, 0.0  ;;  %v1012_v13 = vld [vmem:[%s826_s28 + $0x108] sm:$0xff]  ;;  %v409_v2 = vmul.f32 %v926_v7, %v926_v7 }
  0x28   : > { %v266_v29 = vadd.f32 %v265_v24, %v264_v26  ;;  %v940_v24 = vld [vmem:[%s826_s28 + $0xc0] sm:$0xff] }
  0x2a   : > { %v268_v32 = vadd.f32 %v267_v27, %v266_v29  ;;  %v394_v27 = vmul.f32 %v848_v19, %v848_v19  ;;  %v460_v29 = vsel %vm249_vm1, %v392_v12, 0.0  ;;  %v401_v12 = vmul.f32 %v883_v40, %v883_v40 }
  0x2b   : > { %v461_v19 = vadd.f32 %v460_v29, %v459_v16  ;;  %v1020_v16 = vld [vmem:[%s826_s28 + $0x110] sm:$0xff] }
  0x2c   : > { %v270_v35 = vadd.f32 %v269_v30, %v268_v32  ;;  %v297_v30 = vsel %vm249_vm1, %v940_v24, 0.0  ;;  %v948_v32 = vld [vmem:[%s826_s28 + $0xc8] sm:$0xff]  ;;  %v478_v29 = vsel %vm249_vm1, %v401_v12, 0.0  ;;  %v410_v12 = vmul.f32 %v932_v17, %v932_v17 }
  0x2e   : > { %v272_v38 = vadd.f32 %v271_v33, %v270_v35  ;;  %v395_v35 = vmul.f32 %v853_v22, %v853_v22 }
  0x30   : > { %v274_v41 = vadd.f32 %v273_v36, %v272_v38  ;;  %v462_v36 = vsel %vm249_vm1, %v393_v20, 0.0  ;;  %v299_v38 = vsel %vm249_vm1, %v948_v32, 0.0  ;;  %v402_v20 = vmul.f32 %v888_v43, %v888_v43 }
  0x31   : > { %v463_v22 = vadd.f32 %v462_v36, %v461_v19  ;;  %v1028_v19 = vld [vmem:[%s826_s28 + $0x118] sm:$0xff] }
  0x32   : > { %v276_v44 = vadd.f32 %v275_v39, %v274_v41  ;;  %v956_v39 = vld [vmem:[%s826_s28 + $0xd0] sm:$0xff]  ;;  %v480_v36 = vsel %vm249_vm1, %v402_v20, 0.0  ;;  %v411_v20 = vmul.f32 %v940_v24, %v940_v24 }
  0x34   : > { %v278_v47 = vadd.f32 %v277_v42, %v276_v44  ;;  %v396_v42 = vmul.f32 %v858_v25, %v858_v25  ;;  %v464_v44 = vsel %vm249_vm1, %v394_v27, 0.0  ;;  %v403_v27 = vmul.f32 %v893_v46, %v893_v46 }
  0x35   : > { %v465_v25 = vadd.f32 %v464_v44, %v463_v22  ;;  %v1036_v22 = vld [vmem:[%s826_s28 + $0x120] sm:$0xff] }
  0x36   : > { %v280_v50 = vadd.f32 %v279_v45, %v278_v47  ;;  %v301_v45 = vsel %vm249_vm1, %v956_v39, 0.0  ;;  %v964_v47 = vld [vmem:[%s826_s28 + $0xd8] sm:$0xff]  ;;  %v468_v58 = vsel %vm249_vm1, %v396_v42, 0.0  ;;  %v405_v42 = vmul.f32 %v903_v52, %v903_v52 }
  0x37   : > { %v482_v44 = vsel %vm249_vm1, %v403_v27, 0.0  ;;  %v412_v27 = vmul.f32 %v948_v32, %v948_v32 }
  0x38   : > { %v282_v53 = vadd.f32 %v281_v48, %v280_v50  ;;  %v397_v50 = vmul.f32 %v863_v28, %v863_v28 }
  0x3a   : > { %v284_v57 = vadd.f32 %v283_v51, %v282_v53  ;;  %v466_v51 = vsel %vm249_vm1, %v395_v35, 0.0  ;;  %v303_v53 = vsel %vm249_vm1, %v964_v47, 0.0  ;;  %v404_v35 = vmul.f32 %v898_v49, %v898_v49 }
  0x3b   : > { %v467_v28 = vadd.f32 %v466_v51, %v465_v25  ;;  %v1044_v25 = vld [vmem:[%s826_s28 + $0x128] sm:$0xff] }
  0x3c   : > { %v286_v62 = vadd.f32 %v285_v54, %v284_v57  ;;  %v972_v54 = vld [vmem:[%s826_s28 + $0xe0] sm:$0xff]  ;;  %v398_v57 = vmul.f32 %v868_v31, %v868_v31  ;;  %v484_v51 = vsel %vm249_vm1, %v404_v35, 0.0  ;;  %v413_v35 = vmul.f32 %v956_v39, %v956_v39 }
  0x3d   : > { %v305_v59 = vsel %vm249_vm1, %v972_v54, 0.0  ;;  %v469_v31 = vadd.f32 %v468_v58, %v467_v28  ;;  %v486_v58 = vsel %vm249_vm1, %v405_v42, 0.0  ;;  %v1052_v28 = vld [vmem:[%s826_s28 + $0x130] sm:$0xff]  ;;  %v414_v42 = vmul.f32 %v964_v47, %v964_v47 }
  0x3e   : > { %v288_v5 = vadd.f32 %v287_v60, %v286_v62  ;;  %v980_v60 = vld [vmem:[%s826_s28 + $0xe8] sm:$0xff]  ;;  %v472_v3 = vsel %vm249_vm1, %v398_v57, 0.0  ;;  %v407_v57 = vmul.f32 %v913_v61, %v913_v61 }
  0x3f   : > { %v307_v4 = vsel %vm249_vm1, %v980_v60, 0.0 }
  0x40   : > { %v290_v11 = vadd.f32 %v289_v0, %v288_v5  ;;  %v470_v0 = vsel %vm249_vm1, %v397_v50, 0.0  ;;  %v988_v5 = vld [vmem:[%s826_s28 + $0xf0] sm:$0xff]  ;;  %v406_v50 = vmul.f32 %v908_v56, %v908_v56 }
  0x41   : > { %v471_v34 = vadd.f32 %v470_v0, %v469_v31  ;;  %v1060_v31 = vld [vmem:[%s826_s28 + $0x138] sm:$0xff] }
  0x42   : > { %v292_v18 = vadd.f32 %v291_v8, %v290_v11  ;;  %v309_v8 = vsel %vm249_vm1, %v988_v5, 0.0  ;;  %v488_v0 = vsel %vm249_vm1, %v406_v50, 0.0  ;;  %v415_v50 = vmul.f32 %v972_v54, %v972_v54 }
  0x43   : > { %v473_v37 = vadd.f32 %v472_v3, %v471_v34  ;;  %v490_v3 = vsel %vm249_vm1, %v407_v57, 0.0  ;;  %v1068_v34 = vld [vmem:[%s826_s28 + $0x140] sm:$0xff]  ;;  %v416_v57 = vmul.f32 %v980_v60, %v980_v60 }
  0x44   : > { %v294_v26 = vadd.f32 %v293_v15, %v292_v18  ;;  %v311_v15 = vsel %vm249_vm1, %v996_v9, 0.0 }
  0x45   : > { %v475_v40 = vadd.f32 %v474_v14, %v473_v37  ;;  %v492_v14 = vsel %vm249_vm1, %v408_v63, 0.0  ;;  %v1076_v37 = vld [vmem:[%s826_s28 + $0x148] sm:$0xff]  ;;  %v417_v63 = vmul.f32 %v988_v5, %v988_v5 }
  0x46   : > { %v296_v33 = vadd.f32 %v295_v23, %v294_v26  ;;  %v313_v23 = vsel %vm249_vm1, %v1004_v10, 0.0 }
  0x47   : > { %v477_v43 = vadd.f32 %v476_v21, %v475_v40  ;;  %v494_v21 = vsel %vm249_vm1, %v409_v2, 0.0  ;;  %v1084_v40 = vld [vmem:[%s826_s28 + $0x150] sm:$0xff]  ;;  %v418_v2 = vmul.f32 %v996_v9, %v996_v9 }
  0x48   : > { %v298_v41 = vadd.f32 %v297_v30, %v296_v33  ;;  %v315_v30 = vsel %vm249_vm1, %v1012_v13, 0.0 }
  0x49   : > { %v479_v46 = vadd.f32 %v478_v29, %v477_v43  ;;  %v496_v29 = vsel %vm249_vm1, %v410_v12, 0.0  ;;  %v1092_v43 = vld [vmem:[%s826_s28 + $0x158] sm:$0xff]  ;;  %v419_v12 = vmul.f32 %v1004_v10, %v1004_v10 }
  0x4a   : > { %v300_v48 = vadd.f32 %v299_v38, %v298_v41  ;;  %v317_v38 = vsel %vm249_vm1, %v1020_v16, 0.0 }
  0x4b   : > { %v481_v49 = vadd.f32 %v480_v36, %v479_v46  ;;  %v498_v36 = vsel %vm249_vm1, %v411_v20, 0.0  ;;  %v1100_v46 = vld [vmem:[%s826_s28 + $0x160] sm:$0xff]  ;;  %v420_v20 = vmul.f32 %v1012_v13, %v1012_v13 }
  0x4c   : > { %v302_v55 = vadd.f32 %v301_v45, %v300_v48  ;;  %v319_v45 = vsel %vm249_vm1, %v1028_v19, 0.0 }
  0x4d   : > { %v483_v52 = vadd.f32 %v482_v44, %v481_v49  ;;  %v500_v44 = vsel %vm249_vm1, %v412_v27, 0.0  ;;  %v1108_v49 = vld [vmem:[%s826_s28 + $0x168] sm:$0xff]  ;;  %v421_v27 = vmul.f32 %v1020_v16, %v1020_v16 }
  0x4e   : > { %v304_v62 = vadd.f32 %v303_v53, %v302_v55  ;;  %v321_v53 = vsel %vm249_vm1, %v1036_v22, 0.0 }
  0x4f   : > { %v485_v56 = vadd.f32 %v484_v51, %v483_v52  ;;  %v502_v51 = vsel %vm249_vm1, %v413_v35, 0.0  ;;  %v1116_v52 = vld [vmem:[%s826_s28 + $0x170] sm:$0xff]  ;;  %v422_v35 = vmul.f32 %v1028_v19, %v1028_v19 }
  0x50   : > { %v306_v6 = vadd.f32 %v305_v59, %v304_v62  ;;  %v323_v59 = vsel %vm249_vm1, %v1044_v25, 0.0 }
  0x51   : > { %v487_v61 = vadd.f32 %v486_v58, %v485_v56  ;;  %v504_v58 = vsel %vm249_vm1, %v414_v42, 0.0  ;;  %v1124_v56 = vld [vmem:[%s826_s28 + $0x178] sm:$0xff]  ;;  %v423_v42 = vmul.f32 %v1036_v22, %v1036_v22 }
  0x52   : > { %v308_v11 = vadd.f32 %v307_v4, %v306_v6  ;;  %v325_v4 = vsel %vm249_vm1, %v1052_v28, 0.0 }
  0x53   : > { %v489_v1 = vadd.f32 %v488_v0, %v487_v61  ;;  %v506_v0 = vsel %vm249_vm1, %v415_v50, 0.0  ;;  %v1132_v61 = vld [vmem:[%s826_s28 + $0x180] sm:$0xff]  ;;  %v424_v50 = vmul.f32 %v1044_v25, %v1044_v25 }
  0x54   : > { %v310_v18 = vadd.f32 %v309_v8, %v308_v11  ;;  %v327_v8 = vsel %vm249_vm1, %v1060_v31, 0.0 }
  0x55   : > { %v491_v7 = vadd.f32 %v490_v3, %v489_v1  ;;  %v508_v3 = vsel %vm249_vm1, %v416_v57, 0.0  ;;  %v1140_v1 = vld [vmem:[%s826_s28 + $0x188] sm:$0xff]  ;;  %v425_v57 = vmul.f32 %v1052_v28, %v1052_v28 }
  0x56   : > { %v312_v26 = vadd.f32 %v311_v15, %v310_v18  ;;  %v329_v15 = vsel %vm249_vm1, %v1068_v34, 0.0 }
  0x57   : > { %v493_v17 = vadd.f32 %v492_v14, %v491_v7  ;;  %v510_v14 = vsel %vm249_vm1, %v417_v63, 0.0  ;;  %v1148_v7 = vld [vmem:[%s826_s28 + $0x190] sm:$0xff]  ;;  %v426_v63 = vmul.f32 %v1060_v31, %v1060_v31 }
  0x58   : > { %v314_v33 = vadd.f32 %v313_v23, %v312_v26  ;;  %v331_v23 = vsel %vm249_vm1, %v1076_v37, 0.0 }
  0x59   : > { %v495_v24 = vadd.f32 %v494_v21, %v493_v17  ;;  %v512_v21 = vsel %vm249_vm1, %v418_v2, 0.0  ;;  %v1156_v17 = vld [vmem:[%s826_s28 + $0x198] sm:$0xff]  ;;  %v427_v2 = vmul.f32 %v1068_v34, %v1068_v34 }
  0x5a   : > { %v316_v41 = vadd.f32 %v315_v30, %v314_v33  ;;  %v333_v30 = vsel %vm249_vm1, %v1084_v40, 0.0 }
  0x5b   : > { %v497_v32 = vadd.f32 %v496_v29, %v495_v24  ;;  %v514_v29 = vsel %vm249_vm1, %v419_v12, 0.0  ;;  %v1164_v24 = vld [vmem:[%s826_s28 + $0x1a0] sm:$0xff]  ;;  %v428_v12 = vmul.f32 %v1076_v37, %v1076_v37 }
  0x5c   : > { %v318_v48 = vadd.f32 %v317_v38, %v316_v41  ;;  %v335_v38 = vsel %vm249_vm1, %v1092_v43, 0.0 }
  0x5d   : > { %v499_v39 = vadd.f32 %v498_v36, %v497_v32  ;;  %v516_v36 = vsel %vm249_vm1, %v420_v20, 0.0  ;;  %v1172_v32 = vld [vmem:[%s826_s28 + $0x1a8] sm:$0xff]  ;;  %v429_v20 = vmul.f32 %v1084_v40, %v1084_v40 }
  0x5e   : > { %v320_v55 = vadd.f32 %v319_v45, %v318_v48  ;;  %v337_v45 = vsel %vm249_vm1, %v1100_v46, 0.0 }
  0x5f   : > { %v501_v47 = vadd.f32 %v500_v44, %v499_v39  ;;  %v518_v44 = vsel %vm249_vm1, %v421_v27, 0.0  ;;  %v1180_v39 = vld [vmem:[%s826_s28 + $0x1b0] sm:$0xff]  ;;  %v430_v27 = vmul.f32 %v1092_v43, %v1092_v43 }
  0x60   : > { %v322_v62 = vadd.f32 %v321_v53, %v320_v55  ;;  %v339_v53 = vsel %vm249_vm1, %v1108_v49, 0.0  ;;  %v1244_v43 = vld [vmem:[%s826_s28 + $0x1f0] sm:$0xff] }
  0x61   : > { %v503_v54 = vadd.f32 %v502_v51, %v501_v47  ;;  %v520_v51 = vsel %vm249_vm1, %v422_v35, 0.0  ;;  %v1188_v47 = vld [vmem:[%s826_s28 + $0x1b8] sm:$0xff]  ;;  %v431_v35 = vmul.f32 %v1100_v46, %v1100_v46 }
  0x62   : > { %v324_v6 = vadd.f32 %v323_v59, %v322_v62  ;;  %v341_v59 = vsel %vm249_vm1, %v1116_v52, 0.0 }
  0x63   : > { %v505_v60 = vadd.f32 %v504_v58, %v503_v54  ;;  %v522_v58 = vsel %vm249_vm1, %v423_v42, 0.0  ;;  %v1196_v54 = vld [vmem:[%s826_s28 + $0x1c0] sm:$0xff]  ;;  %v432_v42 = vmul.f32 %v1108_v49, %v1108_v49  ;;  %v434_v49 = vmul.f32 %v1124_v56, %v1124_v56 }
  0x64   : > { %v326_v11 = vadd.f32 %v325_v4, %v324_v6  ;;  %v343_v4 = vsel %vm249_vm1, %v1124_v56, 0.0  ;;  %v437_v56 = vmul.f32 %v1148_v7, %v1148_v7 }
  0x65   : > { %v507_v5 = vadd.f32 %v506_v0, %v505_v60  ;;  %v524_v0 = vsel %vm249_vm1, %v424_v50, 0.0  ;;  %v1204_v60 = vld [vmem:[%s826_s28 + $0x1c8] sm:$0xff]  ;;  %v433_v50 = vmul.f32 %v1116_v52, %v1116_v52 }
  0x66   : > { %v328_v18 = vadd.f32 %v327_v8, %v326_v11  ;;  %v345_v8 = vsel %vm249_vm1, %v1132_v61, 0.0 }
  0x67   : > { %v509_v9 = vadd.f32 %v508_v3, %v507_v5  ;;  %v526_v3 = vsel %vm249_vm1, %v425_v57, 0.0  ;;  %v1212_v5 = vld [vmem:[%s826_s28 + $0x1d0] sm:$0xff]  ;;  %v540_v57 = vsel %vm249_vm1, %v432_v42, 0.0 }
  0x68   : > { %v330_v26 = vadd.f32 %v329_v15, %v328_v18  ;;  %v347_v15 = vsel %vm249_vm1, %v1140_v1, 0.0 }
  0x69   : > { %v511_v10 = vadd.f32 %v510_v14, %v509_v9  ;;  %v528_v14 = vsel %vm249_vm1, %v426_v63, 0.0  ;;  %v1220_v9 = vld [vmem:[%s826_s28 + $0x1d8] sm:$0xff] }
  0x6a   : > { %v332_v33 = vadd.f32 %v331_v23, %v330_v26  ;;  %v349_v23 = vsel %vm249_vm1, %v1148_v7, 0.0  ;;  %v440_v7 = vmul.f32 %v1172_v32, %v1172_v32 }
  0x6b   : > { %v513_v13 = vadd.f32 %v512_v21, %v511_v10  ;;  %v530_v21 = vsel %vm249_vm1, %v427_v2, 0.0  ;;  %v1228_v10 = vld [vmem:[%s826_s28 + $0x1e0] sm:$0xff] }
  0x6c   : > { %v334_v41 = vadd.f32 %v333_v30, %v332_v33  ;;  %v351_v30 = vsel %vm249_vm1, %v1156_v17, 0.0 }
  0x6d   : > { %v515_v16 = vadd.f32 %v514_v29, %v513_v13  ;;  %v532_v29 = vsel %vm249_vm1, %v428_v12, 0.0  ;;  %v1236_v13 = vld [vmem:[%s826_s28 + $0x1e8] sm:$0xff] }
  0x6e   : > { %v336_v48 = vadd.f32 %v335_v38, %v334_v41  ;;  %v353_v38 = vsel %vm249_vm1, %v1164_v24, 0.0 }
  0x6f   : > { %v517_v19 = vadd.f32 %v516_v36, %v515_v16  ;;  %v534_v36 = vsel %vm249_vm1, %v429_v20, 0.0  ;;  %v248_v20 = vld [vmem:[%s816_s20] sm:$0x1] }
  0x70   : > { %v338_v55 = vadd.f32 %v337_v45, %v336_v48  ;;  %v355_v45 = vsel %vm249_vm1, %v1172_v32, 0.0  ;;  %v443_v32 = vmul.f32 %v1196_v54, %v1196_v54 }
  0x71   : > { %v519_v22 = vadd.f32 %v518_v44, %v517_v19  ;;  %v536_v44 = vsel %vm249_vm1, %v430_v27, 0.0  ;;  %v442_v27 = vmul.f32 %v1188_v47, %v1188_v47 }
  0x72   : > { %v340_v62 = vadd.f32 %v339_v53, %v338_v55  ;;  %v357_v53 = vsel %vm249_vm1, %v1180_v39, 0.0 }
  0x73   : > { %v521_v25 = vadd.f32 %v520_v51, %v519_v22  ;;  %v538_v51 = vsel %vm249_vm1, %v431_v35, 0.0  ;;  %v560_v35 = vsel %vm249_vm1, %v442_v27, 0.0 }
  0x74   : > { %v342_v6 = vadd.f32 %v341_v59, %v340_v62  ;;  %v359_v59 = vsel %vm249_vm1, %v1188_v47, 0.0  ;;  %v445_v47 = vmul.f32 %v1212_v5, %v1212_v5 }
  0x75   : > { %v523_v28 = vadd.f32 %v522_v58, %v521_v25  ;;  %v435_v25 = vmul.f32 %v1132_v61, %v1132_v61  ;;  %v438_v61 = vmul.f32 %v1156_v17, %v1156_v17 }
  0x76   : > { %v344_v11 = vadd.f32 %v343_v4, %v342_v6  ;;  %v361_v4 = vsel %vm249_vm1, %v1196_v54, 0.0 }
  0x77   : > { %v525_v31 = vadd.f32 %v524_v0, %v523_v28  ;;  %v436_v0 = vmul.f32 %v1140_v1, %v1140_v1  ;;  %v546_v2 = vsel %vm249_vm1, %v435_v25, 0.0  ;;  %v439_v1 = vmul.f32 %v1164_v24, %v1164_v24 }
  0x78   : > { %v346_v18 = vadd.f32 %v345_v8, %v344_v11  ;;  %v363_v8 = vsel %vm249_vm1, %v1204_v60, 0.0 }
  0x79   : > { %v527_v34 = vadd.f32 %v526_v3, %v525_v31  ;;  %v548_v31 = vsel %vm249_vm1, %v436_v0, 0.0 }
  0x7a   : > { %v348_v26 = vadd.f32 %v347_v15, %v346_v18  ;;  %v365_v15 = vsel %vm249_vm1, %v1212_v5, 0.0 }
  0x7b   : > { %v529_v37 = vadd.f32 %v528_v14, %v527_v34  ;;  %v550_v14 = vsel %vm249_vm1, %v437_v56, 0.0 }
  0x7c   : > { %v350_v33 = vadd.f32 %v349_v23, %v348_v26  ;;  %v367_v23 = vsel %vm249_vm1, %v1220_v9, 0.0 }
  0x7d   : > { %v531_v40 = vadd.f32 %v530_v21, %v529_v37  ;;  %v554_v37 = vsel %vm249_vm1, %v439_v1, 0.0 }
  0x7e   : > { %v352_v41 = vadd.f32 %v351_v30, %v350_v33  ;;  %v369_v30 = vsel %vm249_vm1, %v1228_v10, 0.0 }
  0x7f   : > { %v533_v16 = vadd.f32 %v532_v29, %v531_v40  ;;  %v556_v29 = vsel %vm249_vm1, %v440_v7, 0.0 }
  0x80   : > { %v354_v48 = vadd.f32 %v353_v38, %v352_v41  ;;  %v371_v38 = vsel %vm249_vm1, %v1236_v13, 0.0 }
  0x81   : > { %v535_v19 = vadd.f32 %v534_v36, %v533_v16 }
  0x82   : > { %v356_v55 = vadd.f32 %v355_v45, %v354_v48  ;;  %v373_v45 = vsel %vm249_vm1, %v1244_v43, 0.0  ;;  %v1252_v48 = vld [vmem:[%s826_s28 + $0x1f8] sm:$0xff] }
  0x83   : > { %v537_v22 = vadd.f32 %v536_v44, %v535_v19  ;;  %v447_v44 = vmul.f32 %v1228_v10, %v1228_v10  ;;  %v448_v19 = vmul.f32 %v1236_v13, %v1236_v13 }
  0x84   : > { %v358_v62 = vadd.f32 %v357_v53, %v356_v55  ;;  %v375_v53 = vsel %vm249_vm1, %v1252_v48, 0.0 }
  0x85   : > { %v539_v58 = vadd.f32 %v538_v51, %v537_v22  ;;  %v572_v10 = vsel %vm249_vm1, %v448_v19, 0.0 }
  0x86   : > { %v360_v6 = vadd.f32 %v359_v59, %v358_v62  ;;  %v542_v62 = vsel %vm249_vm1, %v433_v50, 0.0  ;;  %v449_v50 = vmul.f32 %v1244_v43, %v1244_v43 }
  0x87   : > { %v541_v52 = vadd.f32 %v540_v57, %v539_v58 }
  0x88   : > { %v362_v11 = vadd.f32 %v361_v4, %v360_v6  ;;  %v544_v4 = vsel %vm249_vm1, %v434_v49, 0.0 }
  0x89   : > { %v543_v28 = vadd.f32 %v542_v62, %v541_v52 }
  0x8a   : > { %v364_v18 = vadd.f32 %v363_v8, %v362_v11 }
  0x8b   : > { %v545_v3 = vadd.f32 %v544_v4, %v543_v28 }
  0x8c   : > { %v366_v26 = vadd.f32 %v365_v15, %v364_v18  ;;  %v552_v18 = vsel %vm249_vm1, %v438_v61, 0.0 }
  0x8d   : > { %v547_v11 = vadd.f32 %v546_v2, %v545_v3 }
  0x8e   : > { %v368_v33 = vadd.f32 %v367_v23, %v366_v26  ;;  %v441_v23 = vmul.f32 %v1180_v39, %v1180_v39  ;;  %v444_v39 = vmul.f32 %v1204_v60, %v1204_v60  ;;  %v566_v60 = vsel %vm249_vm1, %v445_v47, 0.0 }
  0x8f   : > { %v549_v15 = vadd.f32 %v548_v31, %v547_v11 }
  0x90   : > { %v370_v41 = vadd.f32 %v369_v30, %v368_v33  ;;  %v558_v40 = vsel %vm249_vm1, %v441_v23, 0.0  ;;  %v564_v54 = vsel %vm249_vm1, %v444_v39, 0.0 }
  0x91   : > { %v551_v21 = vadd.f32 %v550_v14, %v549_v15 }
  0x92   : > { %v372_v46 = vadd.f32 %v371_v38, %v370_v41  ;;  %v562_v38 = vsel %vm249_vm1, %v443_v32, 0.0  ;;  %v446_v41 = vmul.f32 %v1220_v9, %v1220_v9  ;;  %v570_v9 = vsel %vm249_vm1, %v447_v44, 0.0 }
  0x93   : > { %v553_v24 = vadd.f32 %v552_v18, %v551_v21 }
  0x94   : > { %v374_v55 = vadd.f32 %v373_v45, %v372_v46  ;;  %v568_v5 = vsel %vm249_vm1, %v446_v41, 0.0 }
  0x95   : > { %v555_v30 = vadd.f32 %v554_v37, %v553_v24 }
  0x96   : > { %v376_v59 = vadd.f32 %v375_v53, %v374_v55  ;;  %v450_v53 = vmul.f32 %v1252_v48, %v1252_v48  ;;  %v574_v55 = vsel %vm249_vm1, %v449_v50, 0.0 }
  0x97   : > { %v557_v33 = vadd.f32 %v556_v29, %v555_v30 }
  0x98   : > { %v377_v63 = vrot.slane %v376_v59, 4  ;;  %v576_v49 = vsel %vm249_vm1, %v450_v53, 0.0 }
  0x99   : > { %v559_v36 = vadd.f32 %v558_v40, %v557_v33 }
  0x9a   : > { %v378_v6 = vadd.f32 %v377_v63, %v376_v59  ;;  %v386_v63 = vld [vmem:[%s821_s24] sm:$0x1] }
  0x9b   : > { %v561_v16 = vadd.f32 %v560_v35, %v559_v36 }
  0x9c   : > { %v379_v8 = vrot.slane %v378_v6, 2 }
  0x9d   : > { %v563_v42 = vadd.f32 %v562_v38, %v561_v16 }
  0x9e   : > { %v380_v12 = vadd.f32 %v379_v8, %v378_v6 }
  0x9f   : > { %v565_v45 = vadd.f32 %v564_v54, %v563_v42 }
  0xa0   : > { %v381_v34 = vrot.slane %v380_v12, 1 }
  0xa1   : > { %v567_v46 = vadd.f32 %v566_v60, %v565_v45 }
  0xa2   : > { %v382_v17 = vadd.f32 %v381_v34, %v380_v12 }
  0xa3   : > { %v569_v51 = vadd.f32 %v568_v5, %v567_v46 }
  0xa4   : > { %v383_v26 = vadd.f32 %v382_v17, %v248_v20 }
  0xa5   : > { %v571_v22 = vadd.f32 %v570_v9, %v569_v51 }
  0xa6   : > { %385 = vst.msk [vmem:[%s816_s20] sm:$0x1] %vm384_vm2, %v383_v26 }
  0xa7   : > { %v573_v13 = vadd.f32 %v572_v10, %v571_v22 }
  0xa9   : > { %v575_v57 = vadd.f32 %v574_v55, %v573_v13 }
  0xab   : > { %v577_v58 = vadd.f32 %v576_v49, %v575_v57 }
  0xad   : > { %v578_v59 = vrot.slane %v577_v58, 4 }
  0xaf   : > { %v579_v43 = vadd.f32 %v578_v59, %v577_v58 }
  0xb1   : > { %v580_v25 = vrot.slane %v579_v43, 2 }
  0xb3   : > { %v581_v62 = vadd.f32 %v580_v25, %v579_v43 }
  0xb5   : > { %v582_v52 = vrot.slane %v581_v62, 1 }
  0xb7   : > { %v583_v0 = vadd.f32 %v582_v52, %v581_v62 }
  0xb9   : > { %v584_v4 = vadd.f32 %v583_v0, %v386_v63 }
  0xbb   : > { %585 = vst.msk [vmem:[%s821_s24] sm:$0x1] %vm384_vm2, %v584_v4 }
  0xbc PF: > { %s13_s13 = sadd.s32 1, %s765_s13   ;;  %s1336_s9 = smov %s757_s11 }
  0xbd   : > { %p10_p8 = scmp.ge.s32.totalorder %s13_s13, 6   ;;  %s1337_s10 = smov %s761_s12 }
  0xbe   : > { %s1338_s11 = smov %s1341_s14  ;;  %s1339_s12 = smov %s1345_s15 }
  0xbf   :  { %12 = sbr.rel (!%p10_p8) target bundleno = 3 (0x3), region = 70 }

// kernel: upsample_forward.5
= control target key start
LH: loop header
LB: loop body
LE: loop exit
PB: predicated region body
PF: predicated region fallthrough
CT: control target
= control target key end

     0   :  { %s796_s12 = smov 0   ;;  %s798_s13 = smov 0   ;;  %s1181_s0 = inlined_call_operand.vmem [shape: f32[2,1024,32], index: 0, kind: input, shape index: {}]   ;;  %s1182_s1 = inlined_call_operand.vmem [shape: f32[2,1,32], index: 1, kind: input, shape index: {}]   ;;  %s1183_s2 = inlined_call_operand.vmem [shape: f32[2,1,32], index: 2, kind: input, shape index: {}]   ;;  %s1184_s3 = inlined_call_operand.vmem [shape: f32[2,1024,32], index: 3, kind: output, shape index: {}]  }
   0x1   :  { %s800_s14 = smov 0   ;;  %s802_s15 = smov 0  }
   0x2   :  { %s804_s16 = smov 0  }
   0x3 LB: > { %s22_s17 = sadd.s32 1, %s766_s14  ;;  %s25_s18 = sadd.s32 1, %s770_s15  ;;  %s774_s16 = sphi %s804_s16, %s13_s16   ;;  %s770_s15 = sphi %s802_s15, %s1188_s15   ;;  %s766_s14 = sphi %s800_s14, %s1187_s14   ;;  %s762_s13 = sphi %s798_s13, %s1186_s13   ;;  %s758_s12 = sphi %s796_s12, %s1185_s12  }
   0x4   : > { %p23_p0 = scmp.ge.s32.totalorder %s22_s17, 2  ;;  %p685_p1 = scmp.ge.s32.totalorder %s774_s16, 1 }
   0x5   : > { %p174_p2 = scmp.lt.s32.totalorder %s774_s16, 5 }
   0x6   : > { %s1190_s17 = smov (%p23_p0, %s22_s17), 0  ;;  %s1192_s18 = smov (!%p23_p0, %s25_s18), %s770_s15 }
   0x7   : > { %p175_p3 = pnand %p685_p1, %p174_p2  ;;  %p27_p4 = scmp.ge.s32.totalorder %s1192_s18, 2 }
   0x8   : > { %s686_s19 = sshll.u32 (!%p175_p3), %s758_s12, 6  ;;  %p213_p5 = scmp.lt.s32.totalorder (!%p175_p3), %s762_s13, 1 }
   0x9   : > { %s1194_s18 = smov (%p27_p4, %s1192_s18), 0  ;;  %178 = sbr.rel (%p175_p3) target bundleno = 73 (0x49), region = 32 }
   0xa   : > { %p215_p6 = scmp.lt.s32.totalorder (!%p175_p3), %s686_s19, 127 }
   0xe   : > { %s1196_s13 = smov (!%p213_p5, %s762_s13), 1  ;;  %s1198_s19 = smov (!%p215_p6, %s686_s19), 127  ;;  %vm508_vm0 = vcmask 261120  }
   0xf   : > { %s687_s20 = sshll.u32 %s1196_s13, 7  ;;  %s224_s23 = scalar_lea.vmem %s1182_s1, %s1196_s13 }
  0x10   : > { %s218_s24 = sadd.s32 %s687_s20, %s1198_s19  ;;  %s227_s27 = scalar_lea.vmem %s1183_s2, %s1196_s13  ;;  %v832_v0 = vld [vmem:[%s224_s23] ss:$0 sm:$0xff] }
  0x11   : > { %s688_s28 = sshll.u32 %s218_s24, 3  ;;  %v839_v1 = vld [vmem:[%s227_s27] ss:$0 sm:$0xff] }
  0x12   : > { %s837_s4 = scalar_lea.vmem %s1181_s0, %s688_s28  ;;  %s862_s7 = scalar_lea.vmem %s1184_s3, %s688_s28 }
  0x13   : > { %v238_v2 = vld [vmem:[%s837_s4] sm:$0xff]  ;;  %v239_v3 = vld [vmem:[%s837_s4 + $0x8] sm:$0xff]  ;;  %v240_v4 = vld [vmem:[%s837_s4 + $0x10] sm:$0xff] }
  0x14   : > { %v309_v5 = vsub.f32 %v238_v2, %v832_v0  ;;  %v310_v6 = vsub.f32 %v239_v3, %v832_v0  ;;  %v311_v7 = vsub.f32 %v240_v4, %v832_v0  ;;  %v241_v8 = vld [vmem:[%s837_s4 + $0x18] sm:$0xff]  ;;  %v242_v9 = vld [vmem:[%s837_s4 + $0x20] sm:$0xff]  ;;  %v243_v10 = vld [vmem:[%s837_s4 + $0x28] sm:$0xff] }
  0x15   : > { %v312_v11 = vsub.f32 %v241_v8, %v832_v0  ;;  %v313_v12 = vsub.f32 %v242_v9, %v832_v0  ;;  %v314_v13 = vsub.f32 %v243_v10, %v832_v0  ;;  %v244_v14 = vld [vmem:[%s837_s4 + $0x30] sm:$0xff]  ;;  %v245_v15 = vld [vmem:[%s837_s4 + $0x38] sm:$0xff]  ;;  %v246_v24 = vld [vmem:[%s837_s4 + $0x40] sm:$0xff] }
  0x16   : > { %v380_v16 = vmul.f32 %v839_v1, %v309_v5  ;;  %v381_v17 = vmul.f32 %v839_v1, %v310_v6  ;;  %v382_v18 = vmul.f32 %v839_v1, %v311_v7  ;;  %v315_v19 = vsub.f32 %v244_v14, %v832_v0  ;;  %v247_v25 = vld [vmem:[%s837_s4 + $0x48] sm:$0xff]  ;;  %v248_v26 = vld [vmem:[%s837_s4 + $0x50] sm:$0xff]  ;;  %v249_v31 = vld [vmem:[%s837_s4 + $0x58] sm:$0xff] }
  0x17   : > { %v383_v20 = vmul.f32 %v839_v1, %v312_v11  ;;  %v384_v21 = vmul.f32 %v839_v1, %v313_v12  ;;  %v385_v22 = vmul.f32 %v839_v1, %v314_v13  ;;  %v316_v23 = vsub.f32 %v245_v15, %v832_v0  ;;  %v250_v32 = vld [vmem:[%s837_s4 + $0x60] sm:$0xff]  ;;  %v251_v33 = vld [vmem:[%s837_s4 + $0x68] sm:$0xff]  ;;  %v252_v38 = vld [vmem:[%s837_s4 + $0x70] sm:$0xff] }
  0x18   : > { %v444_v27 = vmax.f32 %v380_v16, 0.0  ;;  %v445_v28 = vmax.f32 %v381_v17, 0.0  ;;  %v446_v29 = vmax.f32 %v382_v18, 0.0  ;;  %v386_v30 = vmul.f32 %v839_v1, %v315_v19  ;;  %v253_v43 = vld [vmem:[%s837_s4 + $0x78] sm:$0xff]  ;;  %v254_v56 = vld [vmem:[%s837_s4 + $0x80] sm:$0xff]  ;;  %v255_v57 = vld [vmem:[%s837_s4 + $0x88] sm:$0xff] }
  0x19   : > { %v447_v34 = vmax.f32 %v383_v20, 0.0  ;;  %v448_v35 = vmax.f32 %v384_v21, 0.0  ;;  %v449_v36 = vmax.f32 %v385_v22, 0.0  ;;  %v387_v37 = vmul.f32 %v839_v1, %v316_v23  ;;  %v256_v58 = vld [vmem:[%s837_s4 + $0x90] sm:$0xff]  ;;  %v257_v63 = vld [vmem:[%s837_s4 + $0x98] sm:$0xff]  ;;  %v258_v2 = vld [vmem:[%s837_s4 + $0xa0] sm:$0xff] }
  0x1a   : > { %509 = vst.msk [vmem:[%s862_s7] sm:$0xff] %vm508_vm0, %v444_v27  ;;  %510 = vst.msk [vmem:[%s862_s7 + $0x8] sm:$0xff] %vm508_vm0, %v445_v28  ;;  %v450_v39 = vmax.f32 %v386_v30, 0.0  ;;  %v317_v40 = vsub.f32 %v246_v24, %v832_v0  ;;  %v318_v41 = vsub.f32 %v247_v25, %v832_v0  ;;  %v319_v42 = vsub.f32 %v248_v26, %v832_v0  ;;  %v259_v3 = vld [vmem:[%s837_s4 + $0xa8] sm:$0xff]  ;;  %v260_v8 = vld [vmem:[%s837_s4 + $0xb0] sm:$0xff] }
  0x1b   : > { %511 = vst.msk [vmem:[%s862_s7 + $0x10] sm:$0xff] %vm508_vm0, %v446_v29  ;;  %512 = vst.msk [vmem:[%s862_s7 + $0x18] sm:$0xff] %vm508_vm0, %v447_v34  ;;  %v451_v44 = vmax.f32 %v387_v37, 0.0  ;;  %v320_v45 = vsub.f32 %v249_v31, %v832_v0  ;;  %v321_v46 = vsub.f32 %v250_v32, %v832_v0  ;;  %v322_v47 = vsub.f32 %v251_v33, %v832_v0  ;;  %v261_v13 = vld [vmem:[%s837_s4 + $0xb8] sm:$0xff]  ;;  %v262_v26 = vld [vmem:[%s837_s4 + $0xc0] sm:$0xff] }
  0x1c   : > { %513 = vst.msk [vmem:[%s862_s7 + $0x20] sm:$0xff] %vm508_vm0, %v448_v35  ;;  %514 = vst.msk [vmem:[%s862_s7 + $0x28] sm:$0xff] %vm508_vm0, %v449_v36  ;;  %v388_v48 = vmul.f32 %v839_v1, %v317_v40  ;;  %v389_v49 = vmul.f32 %v839_v1, %v318_v41  ;;  %v390_v50 = vmul.f32 %v839_v1, %v319_v42  ;;  %v263_v27 = vld [vmem:[%s837_s4 + $0xc8] sm:$0xff]  ;;  %v264_v28 = vld [vmem:[%s837_s4 + $0xd0] sm:$0xff] }
  0x1d   : > { %515 = vst.msk [vmem:[%s862_s7 + $0x30] sm:$0xff] %vm508_vm0, %v450_v39  ;;  %v323_v51 = vsub.f32 %v252_v38, %v832_v0  ;;  %516 = vst.msk [vmem:[%s862_s7 + $0x38] sm:$0xff] %vm508_vm0, %v451_v44  ;;  %v391_v52 = vmul.f32 %v839_v1, %v320_v45  ;;  %v392_v53 = vmul.f32 %v839_v1, %v321_v46  ;;  %v265_v33 = vld [vmem:[%s837_s4 + $0xd8] sm:$0xff]  ;;  %v266_v34 = vld [vmem:[%s837_s4 + $0xe0] sm:$0xff] }
  0x1e   : > { %v393_v54 = vmul.f32 %v839_v1, %v322_v47  ;;  %v324_v55 = vsub.f32 %v253_v43, %v832_v0  ;;  %v452_v59 = vmax.f32 %v388_v48, 0.0  ;;  %v453_v60 = vmax.f32 %v389_v49, 0.0  ;;  %v267_v35 = vld [vmem:[%s837_s4 + $0xe8] sm:$0xff]  ;;  %v268_v40 = vld [vmem:[%s837_s4 + $0xf0] sm:$0xff]  ;;  %v269_v45 = vld [vmem:[%s837_s4 + $0xf8] sm:$0xff] }
  0x1f   : > { %v454_v61 = vmax.f32 %v390_v50, 0.0  ;;  %v394_v62 = vmul.f32 %v839_v1, %v323_v51  ;;  %v455_v4 = vmax.f32 %v391_v52, 0.0  ;;  %v456_v5 = vmax.f32 %v392_v53, 0.0 }
  0x20   : > { %v457_v6 = vmax.f32 %v393_v54, 0.0  ;;  %v395_v7 = vmul.f32 %v839_v1, %v324_v55  ;;  %517 = vst.msk [vmem:[%s862_s7 + $0x40] sm:$0xff] %vm508_vm0, %v452_v59  ;;  %518 = vst.msk [vmem:[%s862_s7 + $0x48] sm:$0xff] %vm508_vm0, %v453_v60  ;;  %v325_v10 = vsub.f32 %v254_v56, %v832_v0  ;;  %v326_v11 = vsub.f32 %v255_v57, %v832_v0  ;;  %v271_v59 = vld [vmem:[%s837_s4 + $0x108] sm:$0xff]  ;;  %v272_v60 = vld [vmem:[%s837_s4 + $0x110] sm:$0xff] }
  0x21   : > { %519 = vst.msk [vmem:[%s862_s7 + $0x50] sm:$0xff] %vm508_vm0, %v454_v61  ;;  %v458_v9 = vmax.f32 %v394_v62, 0.0  ;;  %v327_v12 = vsub.f32 %v256_v58, %v832_v0  ;;  %520 = vst.msk [vmem:[%s862_s7 + $0x58] sm:$0xff] %vm508_vm0, %v455_v4  ;;  %v328_v15 = vsub.f32 %v257_v63, %v832_v0  ;;  %v329_v16 = vsub.f32 %v258_v2, %v832_v0  ;;  %v270_v58 = vld [vmem:[%s837_s4 + $0x100] sm:$0xff] }
  0x22   : > { %521 = vst.msk [vmem:[%s862_s7 + $0x60] sm:$0xff] %vm508_vm0, %v456_v5  ;;  %522 = vst.msk [vmem:[%s862_s7 + $0x68] sm:$0xff] %vm508_vm0, %v457_v6  ;;  %v459_v14 = vmax.f32 %v395_v7, 0.0  ;;  %v330_v17 = vsub.f32 %v259_v3, %v832_v0  ;;  %v396_v18 = vmul.f32 %v839_v1, %v325_v10  ;;  %v397_v19 = vmul.f32 %v839_v1, %v326_v11  ;;  %v273_v3 = vld [vmem:[%s837_s4 + $0x118] sm:$0xff]  ;;  %v274_v4 = vld [vmem:[%s837_s4 + $0x120] sm:$0xff] }
  0x23   : > { %523 = vst.msk [vmem:[%s862_s7 + $0x70] sm:$0xff] %vm508_vm0, %v458_v9  ;;  %v398_v20 = vmul.f32 %v839_v1, %v327_v12  ;;  %v331_v21 = vsub.f32 %v260_v8, %v832_v0  ;;  %v399_v22 = vmul.f32 %v839_v1, %v328_v15  ;;  %v400_v23 = vmul.f32 %v839_v1, %v329_v16  ;;  %v275_v5 = vld [vmem:[%s837_s4 + $0x128] sm:$0xff]  ;;  %v276_v10 = vld [vmem:[%s837_s4 + $0x130] sm:$0xff]  ;;  %v277_v15 = vld [vmem:[%s837_s4 + $0x138] sm:$0xff] }
  0x24   : > { %524 = vst.msk [vmem:[%s862_s7 + $0x78] sm:$0xff] %vm508_vm0, %v459_v14  ;;  %v401_v24 = vmul.f32 %v839_v1, %v330_v17  ;;  %v332_v25 = vsub.f32 %v261_v13, %v832_v0  ;;  %v460_v29 = vmax.f32 %v396_v18, 0.0  ;;  %v461_v30 = vmax.f32 %v397_v19, 0.0 }
  0x25   : > { %v462_v31 = vmax.f32 %v398_v20, 0.0  ;;  %v402_v32 = vmul.f32 %v839_v1, %v331_v21  ;;  %v463_v36 = vmax.f32 %v399_v22, 0.0  ;;  %v464_v37 = vmax.f32 %v400_v23, 0.0 }
  0x26   : > { %v465_v38 = vmax.f32 %v401_v24, 0.0  ;;  %v403_v39 = vmul.f32 %v839_v1, %v332_v25  ;;  %525 = vst.msk [vmem:[%s862_s7 + $0x80] sm:$0xff] %vm508_vm0, %v460_v29  ;;  %526 = vst.msk [vmem:[%s862_s7 + $0x88] sm:$0xff] %vm508_vm0, %v461_v30  ;;  %v333_v42 = vsub.f32 %v262_v26, %v832_v0  ;;  %v334_v43 = vsub.f32 %v263_v27, %v832_v0  ;;  %v279_v29 = vld [vmem:[%s837_s4 + $0x148] sm:$0xff]  ;;  %v280_v30 = vld [vmem:[%s837_s4 + $0x150] sm:$0xff] }
  0x27   : > { %527 = vst.msk [vmem:[%s862_s7 + $0x90] sm:$0xff] %vm508_vm0, %v462_v31  ;;  %v466_v41 = vmax.f32 %v402_v32, 0.0  ;;  %v335_v44 = vsub.f32 %v264_v28, %v832_v0  ;;  %528 = vst.msk [vmem:[%s862_s7 + $0x98] sm:$0xff] %vm508_vm0, %v463_v36  ;;  %v336_v47 = vsub.f32 %v265_v33, %v832_v0  ;;  %v337_v48 = vsub.f32 %v266_v34, %v832_v0  ;;  %v278_v28 = vld [vmem:[%s837_s4 + $0x140] sm:$0xff] }
  0x28   : > { %529 = vst.msk [vmem:[%s862_s7 + $0xa0] sm:$0xff] %vm508_vm0, %v464_v37  ;;  %530 = vst.msk [vmem:[%s862_s7 + $0xa8] sm:$0xff] %vm508_vm0, %v465_v38  ;;  %v467_v46 = vmax.f32 %v403_v39, 0.0  ;;  %v338_v49 = vsub.f32 %v267_v35, %v832_v0  ;;  %v404_v50 = vmul.f32 %v839_v1, %v333_v42  ;;  %v405_v51 = vmul.f32 %v839_v1, %v334_v43  ;;  %v281_v35 = vld [vmem:[%s837_s4 + $0x158] sm:$0xff]  ;;  %v282_v36 = vld [vmem:[%s837_s4 + $0x160] sm:$0xff] }
  0x29   : > { %531 = vst.msk [vmem:[%s862_s7 + $0xb0] sm:$0xff] %vm508_vm0, %v466_v41  ;;  %v406_v52 = vmul.f32 %v839_v1, %v335_v44  ;;  %v339_v53 = vsub.f32 %v268_v40, %v832_v0  ;;  %v407_v54 = vmul.f32 %v839_v1, %v336_v47  ;;  %v408_v55 = vmul.f32 %v839_v1, %v337_v48  ;;  %v283_v37 = vld [vmem:[%s837_s4 + $0x168] sm:$0xff]  ;;  %v284_v42 = vld [vmem:[%s837_s4 + $0x170] sm:$0xff]  ;;  %v285_v47 = vld [vmem:[%s837_s4 + $0x178] sm:$0xff] }
  0x2a   : > { %532 = vst.msk [vmem:[%s862_s7 + $0xb8] sm:$0xff] %vm508_vm0, %v467_v46  ;;  %v409_v56 = vmul.f32 %v839_v1, %v338_v49  ;;  %v340_v57 = vsub.f32 %v269_v45, %v832_v0  ;;  %v468_v61 = vmax.f32 %v404_v50, 0.0  ;;  %v469_v62 = vmax.f32 %v405_v51, 0.0 }
  0x2b   : > { %v470_v63 = vmax.f32 %v406_v52, 0.0  ;;  %v410_v2 = vmul.f32 %v839_v1, %v339_v53  ;;  %v471_v6 = vmax.f32 %v407_v54, 0.0  ;;  %v472_v7 = vmax.f32 %v408_v55, 0.0 }
  0x2c   : > { %v473_v8 = vmax.f32 %v409_v56, 0.0  ;;  %v411_v9 = vmul.f32 %v839_v1, %v340_v57  ;;  %533 = vst.msk [vmem:[%s862_s7 + $0xc0] sm:$0xff] %vm508_vm0, %v468_v61  ;;  %534 = vst.msk [vmem:[%s862_s7 + $0xc8] sm:$0xff] %vm508_vm0, %v469_v62  ;;  %v341_v12 = vsub.f32 %v270_v58, %v832_v0  ;;  %v342_v13 = vsub.f32 %v271_v59, %v832_v0  ;;  %v287_v61 = vld [vmem:[%s837_s4 + $0x188] sm:$0xff]  ;;  %v288_v62 = vld [vmem:[%s837_s4 + $0x190] sm:$0xff] }
  0x2d   : > { %535 = vst.msk [vmem:[%s862_s7 + $0xd0] sm:$0xff] %vm508_vm0, %v470_v63  ;;  %v474_v11 = vmax.f32 %v410_v2, 0.0  ;;  %v343_v14 = vsub.f32 %v272_v60, %v832_v0  ;;  %536 = vst.msk [vmem:[%s862_s7 + $0xd8] sm:$0xff] %vm508_vm0, %v471_v6  ;;  %v344_v17 = vsub.f32 %v273_v3, %v832_v0  ;;  %v345_v18 = vsub.f32 %v274_v4, %v832_v0  ;;  %v286_v60 = vld [vmem:[%s837_s4 + $0x180] sm:$0xff] }
  0x2e   : > { %537 = vst.msk [vmem:[%s862_s7 + $0xe0] sm:$0xff] %vm508_vm0, %v472_v7  ;;  %538 = vst.msk [vmem:[%s862_s7 + $0xe8] sm:$0xff] %vm508_vm0, %v473_v8  ;;  %v475_v16 = vmax.f32 %v411_v9, 0.0  ;;  %v346_v19 = vsub.f32 %v275_v5, %v832_v0  ;;  %v412_v20 = vmul.f32 %v839_v1, %v341_v12  ;;  %v413_v21 = vmul.f32 %v839_v1, %v342_v13  ;;  %v289_v5 = vld [vmem:[%s837_s4 + $0x198] sm:$0xff]  ;;  %v290_v6 = vld [vmem:[%s837_s4 + $0x1a0] sm:$0xff] }
  0x2f   : > { %539 = vst.msk [vmem:[%s862_s7 + $0xf0] sm:$0xff] %vm508_vm0, %v474_v11  ;;  %v414_v22 = vmul.f32 %v839_v1, %v343_v14  ;;  %v347_v23 = vsub.f32 %v276_v10, %v832_v0  ;;  %v415_v24 = vmul.f32 %v839_v1, %v344_v17  ;;  %v416_v25 = vmul.f32 %v839_v1, %v345_v18  ;;  %v291_v7 = vld [vmem:[%s837_s4 + $0x1a8] sm:$0xff]  ;;  %v292_v12 = vld [vmem:[%s837_s4 + $0x1b0] sm:$0xff]  ;;  %v293_v17 = vld [vmem:[%s837_s4 + $0x1b8] sm:$0xff] }
  0x30   : > { %540 = vst.msk [vmem:[%s862_s7 + $0xf8] sm:$0xff] %vm508_vm0, %v475_v16  ;;  %v417_v26 = vmul.f32 %v839_v1, %v346_v19  ;;  %v348_v27 = vsub.f32 %v277_v15, %v832_v0  ;;  %v476_v31 = vmax.f32 %v412_v20, 0.0  ;;  %v477_v32 = vmax.f32 %v413_v21, 0.0 }
  0x31   : > { %v478_v33 = vmax.f32 %v414_v22, 0.0  ;;  %v418_v34 = vmul.f32 %v839_v1, %v347_v23  ;;  %v479_v38 = vmax.f32 %v415_v24, 0.0  ;;  %v480_v39 = vmax.f32 %v416_v25, 0.0 }
  0x32   : > { %v481_v40 = vmax.f32 %v417_v26, 0.0  ;;  %v419_v41 = vmul.f32 %v839_v1, %v348_v27  ;;  %541 = vst.msk [vmem:[%s862_s7 + $0x100] sm:$0xff] %vm508_vm0, %v476_v31  ;;  %542 = vst.msk [vmem:[%s862_s7 + $0x108] sm:$0xff] %vm508_vm0, %v477_v32  ;;  %v349_v44 = vsub.f32 %v278_v28, %v832_v0  ;;  %v350_v45 = vsub.f32 %v279_v29, %v832_v0  ;;  %v295_v31 = vld [vmem:[%s837_s4 + $0x1c8] sm:$0xff]  ;;  %v296_v32 = vld [vmem:[%s837_s4 + $0x1d0] sm:$0xff] }
  0x33   : > { %543 = vst.msk [vmem:[%s862_s7 + $0x110] sm:$0xff] %vm508_vm0, %v478_v33  ;;  %v482_v43 = vmax.f32 %v418_v34, 0.0  ;;  %v351_v46 = vsub.f32 %v280_v30, %v832_v0  ;;  %544 = vst.msk [vmem:[%s862_s7 + $0x118] sm:$0xff] %vm508_vm0, %v479_v38  ;;  %v352_v49 = vsub.f32 %v281_v35, %v832_v0  ;;  %v353_v50 = vsub.f32 %v282_v36, %v832_v0  ;;  %v294_v30 = vld [vmem:[%s837_s4 + $0x1c0] sm:$0xff] }
  0x34   : > { %545 = vst.msk [vmem:[%s862_s7 + $0x120] sm:$0xff] %vm508_vm0, %v480_v39  ;;  %546 = vst.msk [vmem:[%s862_s7 + $0x128] sm:$0xff] %vm508_vm0, %v481_v40  ;;  %v483_v48 = vmax.f32 %v419_v41, 0.0  ;;  %v354_v51 = vsub.f32 %v283_v37, %v832_v0  ;;  %v420_v52 = vmul.f32 %v839_v1, %v349_v44  ;;  %v421_v53 = vmul.f32 %v839_v1, %v350_v45  ;;  %v297_v37 = vld [vmem:[%s837_s4 + $0x1d8] sm:$0xff]  ;;  %v298_v38 = vld [vmem:[%s837_s4 + $0x1e0] sm:$0xff] }
  0x35   : > { %547 = vst.msk [vmem:[%s862_s7 + $0x130] sm:$0xff] %vm508_vm0, %v482_v43  ;;  %v422_v54 = vmul.f32 %v839_v1, %v351_v46  ;;  %v355_v55 = vsub.f32 %v284_v42, %v832_v0  ;;  %v423_v56 = vmul.f32 %v839_v1, %v352_v49  ;;  %v424_v57 = vmul.f32 %v839_v1, %v353_v50  ;;  %v299_v39 = vld [vmem:[%s837_s4 + $0x1e8] sm:$0xff]  ;;  %v300_v44 = vld [vmem:[%s837_s4 + $0x1f0] sm:$0xff]  ;;  %v301_v49 = vld [vmem:[%s837_s4 + $0x1f8] sm:$0xff] }
  0x36   : > { %548 = vst.msk [vmem:[%s862_s7 + $0x138] sm:$0xff] %vm508_vm0, %v483_v48  ;;  %v425_v58 = vmul.f32 %v839_v1, %v354_v51  ;;  %v356_v59 = vsub.f32 %v285_v47, %v832_v0  ;;  %v484_v63 = vmax.f32 %v420_v52, 0.0  ;;  %v485_v2 = vmax.f32 %v421_v53, 0.0 }
  0x37   : > { %v486_v3 = vmax.f32 %v422_v54, 0.0  ;;  %v426_v4 = vmul.f32 %v839_v1, %v355_v55  ;;  %v487_v8 = vmax.f32 %v423_v56, 0.0  ;;  %v488_v9 = vmax.f32 %v424_v57, 0.0 }
  0x38   : > { %v489_v10 = vmax.f32 %v425_v58, 0.0  ;;  %v427_v11 = vmul.f32 %v839_v1, %v356_v59  ;;  %549 = vst.msk [vmem:[%s862_s7 + $0x140] sm:$0xff] %vm508_vm0, %v484_v63  ;;  %550 = vst.msk [vmem:[%s862_s7 + $0x148] sm:$0xff] %vm508_vm0, %v485_v2  ;;  %v357_v14 = vsub.f32 %v286_v60, %v832_v0  ;;  %v358_v15 = vsub.f32 %v287_v61, %v832_v0 }
  0x39   : > { %551 = vst.msk [vmem:[%s862_s7 + $0x150] sm:$0xff] %vm508_vm0, %v486_v3  ;;  %v490_v13 = vmax.f32 %v426_v4, 0.0  ;;  %v359_v16 = vsub.f32 %v288_v62, %v832_v0  ;;  %552 = vst.msk [vmem:[%s862_s7 + $0x158] sm:$0xff] %vm508_vm0, %v487_v8  ;;  %v360_v19 = vsub.f32 %v289_v5, %v832_v0  ;;  %v361_v20 = vsub.f32 %v290_v6, %v832_v0 }
  0x3a   : > { %553 = vst.msk [vmem:[%s862_s7 + $0x160] sm:$0xff] %vm508_vm0, %v488_v9  ;;  %554 = vst.msk [vmem:[%s862_s7 + $0x168] sm:$0xff] %vm508_vm0, %v489_v10  ;;  %v491_v18 = vmax.f32 %v427_v11, 0.0  ;;  %v362_v21 = vsub.f32 %v291_v7, %v832_v0  ;;  %v428_v22 = vmul.f32 %v839_v1, %v357_v14  ;;  %v429_v23 = vmul.f32 %v839_v1, %v358_v15 }
  0x3b   : > { %555 = vst.msk [vmem:[%s862_s7 + $0x170] sm:$0xff] %vm508_vm0, %v490_v13  ;;  %v430_v24 = vmul.f32 %v839_v1, %v359_v16  ;;  %v363_v25 = vsub.f32 %v292_v12, %v832_v0  ;;  %v431_v26 = vmul.f32 %v839_v1, %v360_v19  ;;  %v432_v27 = vmul.f32 %v839_v1, %v361_v20 }
  0x3c   : > { %556 = vst.msk [vmem:[%s862_s7 + $0x178] sm:$0xff] %vm508_vm0, %v491_v18  ;;  %v433_v28 = vmul.f32 %v839_v1, %v362_v21  ;;  %v364_v29 = vsub.f32 %v293_v17, %v832_v0  ;;  %v492_v33 = vmax.f32 %v428_v22, 0.0  ;;  %v493_v34 = vmax.f32 %v429_v23, 0.0 }
  0x3d   : > { %v494_v35 = vmax.f32 %v430_v24, 0.0  ;;  %v434_v36 = vmul.f32 %v839_v1, %v363_v25  ;;  %v495_v40 = vmax.f32 %v431_v26, 0.0  ;;  %v496_v41 = vmax.f32 %v432_v27, 0.0 }
  0x3e   : > { %v497_v42 = vmax.f32 %v433_v28, 0.0  ;;  %v435_v43 = vmul.f32 %v839_v1, %v364_v29  ;;  %557 = vst.msk [vmem:[%s862_s7 + $0x180] sm:$0xff] %vm508_vm0, %v492_v33  ;;  %558 = vst.msk [vmem:[%s862_s7 + $0x188] sm:$0xff] %vm508_vm0, %v493_v34  ;;  %v365_v46 = vsub.f32 %v294_v30, %v832_v0  ;;  %v366_v47 = vsub.f32 %v295_v31, %v832_v0 }
  0x3f   : > { %559 = vst.msk [vmem:[%s862_s7 + $0x190] sm:$0xff] %vm508_vm0, %v494_v35  ;;  %v498_v45 = vmax.f32 %v434_v36, 0.0  ;;  %v367_v48 = vsub.f32 %v296_v32, %v832_v0  ;;  %560 = vst.msk [vmem:[%s862_s7 + $0x198] sm:$0xff] %vm508_vm0, %v495_v40  ;;  %v368_v51 = vsub.f32 %v297_v37, %v832_v0  ;;  %v369_v52 = vsub.f32 %v298_v38, %v832_v0 }
  0x40   : > { %561 = vst.msk [vmem:[%s862_s7 + $0x1a0] sm:$0xff] %vm508_vm0, %v496_v41  ;;  %562 = vst.msk [vmem:[%s862_s7 + $0x1a8] sm:$0xff] %vm508_vm0, %v497_v42  ;;  %v499_v50 = vmax.f32 %v435_v43, 0.0  ;;  %v370_v53 = vsub.f32 %v299_v39, %v832_v0  ;;  %v436_v54 = vmul.f32 %v839_v1, %v365_v46  ;;  %v437_v55 = vmul.f32 %v839_v1, %v366_v47 }
  0x41   : > { %563 = vst.msk [vmem:[%s862_s7 + $0x1b0] sm:$0xff] %vm508_vm0, %v498_v45  ;;  %v438_v56 = vmul.f32 %v839_v1, %v367_v48  ;;  %v371_v57 = vsub.f32 %v300_v44, %v832_v0  ;;  %v439_v58 = vmul.f32 %v839_v1, %v368_v51  ;;  %v440_v59 = vmul.f32 %v839_v1, %v369_v52 }
  0x42   : > { %564 = vst.msk [vmem:[%s862_s7 + $0x1b8] sm:$0xff] %vm508_vm0, %v499_v50  ;;  %v441_v60 = vmul.f32 %v839_v1, %v370_v53  ;;  %v372_v61 = vsub.f32 %v301_v49, %v832_v0  ;;  %v500_v62 = vmax.f32 %v436_v54, 0.0  ;;  %v501_v63 = vmax.f32 %v437_v55, 0.0 }
  0x43   : > { %v502_v2 = vmax.f32 %v438_v56, 0.0  ;;  %v442_v3 = vmul.f32 %v839_v1, %v371_v57  ;;  %v503_v4 = vmax.f32 %v439_v58, 0.0  ;;  %v504_v5 = vmax.f32 %v440_v59, 0.0 }
  0x44   : > { %v505_v6 = vmax.f32 %v441_v60, 0.0  ;;  %v443_v7 = vmul.f32 %v839_v1, %v372_v61  ;;  %565 = vst.msk [vmem:[%s862_s7 + $0x1c0] sm:$0xff] %vm508_vm0, %v500_v62  ;;  %566 = vst.msk [vmem:[%s862_s7 + $0x1c8] sm:$0xff] %vm508_vm0, %v501_v63 }
  0x45   : > { %567 = vst.msk [vmem:[%s862_s7 + $0x1d0] sm:$0xff] %vm508_vm0, %v502_v2  ;;  %v506_v8 = vmax.f32 %v442_v3, 0.0  ;;  %568 = vst.msk [vmem:[%s862_s7 + $0x1d8] sm:$0xff] %vm508_vm0, %v503_v4 }
  0x46   : > { %569 = vst.msk [vmem:[%s862_s7 + $0x1e0] sm:$0xff] %vm508_vm0, %v504_v5  ;;  %570 = vst.msk [vmem:[%s862_s7 + $0x1e8] sm:$0xff] %vm508_vm0, %v505_v6  ;;  %v507_v0 = vmax.f32 %v443_v7, 0.0 }
  0x47   : > { %571 = vst.msk [vmem:[%s862_s7 + $0x1f0] sm:$0xff] %vm508_vm0, %v506_v8 }
  0x48   : > { %572 = vst.msk [vmem:[%s862_s7 + $0x1f8] sm:$0xff] %vm508_vm0, %v507_v0 }
  0x49 PF: > { %s13_s16 = sadd.s32 1, %s774_s16   ;;  %s1185_s12 = smov %s766_s14 }
  0x4a   : > { %p10_p7 = scmp.ge.s32.totalorder %s13_s16, 6   ;;  %s1186_s13 = smov %s770_s15 }
  0x4b   : > { %s1187_s14 = smov %s1190_s17  ;;  %s1188_s15 = smov %s1194_s18 }
  0x4c   :  { %12 = sbr.rel (!%p10_p7) target bundleno = 3 (0x3), region = 68 }

</bundles_post_ra>
